<compile_context>
chip_gen: v5e
topology: v5e:2x2
jax: 0.10.0
libtpu: 0.0.40
codegen_flags: <defaults>
</compile_context>

<pallas_src>
import functools

import numpy as np
import jax
import jax.numpy as jnp
from jax.experimental import pallas as pl
from jax.experimental.pallas import tpu as pltpu

_EPS = 1e-10
_SCALE_FACTOR = 1.0
_THETA_MAX = 1000000.0

# Lanczos approximation (g = 7, n = 9).  torch.lgamma is only evaluated on
# strictly positive arguments here (theta+eps, A+1, A+theta+eps), so the
# z > 0 branch suffices (no reflection formula needed).
_LANCZOS_G = 7.0
_LANCZOS_COEFS = (
    0.99999999999980993,
    676.5203681218851,
    -1259.1392167224028,
    771.32342877765313,
    -176.61502916214059,
    12.507343278686905,
    -0.13857109526572012,
    9.9843695780195716e-6,
    1.5056327351493116e-7,
)
_HALF_LOG_2PI = 0.9189385332046727  # 0.5 * log(2*pi)
# Constant term of the merged t1: the three 0.5*log(2*pi) terms collapse to
# one and the three "-t" terms collapse to -(g + 0.5) = -7.5.
_LGAMMA_CONST = _HALF_LOG_2PI - (_LANCZOS_G + 0.5)


def _lanczos_p_coeffs():
    """Expanded coefficients (low->high) of P(r), where the Lanczos series

        x(zm1) = c0 + sum_{i=1..8} c_i / (zm1 + i)

    rewritten with r = 1/(zm1 + 8) becomes

        x = (c0 * D(r) + r * P(r)) / D(r),    D(r) = prod_{k=1..7} (1 - k*r).

    Evaluating in r keeps every quantity O(1) for all zm1 > -1 (no f32
    overflow even for theta clamped at 1e6 or very large counts) and needs
    a single divide per lgamma instead of eight.
    """
    from numpy.polynomial import polynomial as npoly
    c = np.asarray(_LANCZOS_COEFS, dtype=np.float64)
    facs = [np.array([1.0, -float(k)]) for k in range(8)]   # 1 - k*r
    p = np.zeros(1)
    for k in range(8):                                      # d_k = c[8 - k]
        term = np.array([c[8 - k]])
        for k2 in range(8):
            if k2 != k:
                term = npoly.polymul(term, facs[k2])
        p = npoly.polyadd(p, term)
    p = np.asarray(p, dtype=np.float64)
    if p.size < 8:
        p = np.pad(p, (0, 8 - p.size))
    return tuple(float(v) for v in p[:8])


_P_COEFS = _lanczos_p_coeffs()


def _lanczos_parts(zm1):
    """Return (num, den) with the Lanczos series x(zm1) == num / den."""
    r = 1.0 / (zm1 + 8.0)                       # the single EUP divide
    # den = prod_{k=1..7} (1 - k*r): factored product (VALU only, no
    # catastrophic cancellation even near the zm1 -> -1 pole).
    den = 1.0 - r
    for k in range(2, 8):
        den = den * (1.0 - float(k) * r)
    # P(r) via Horner on precomputed coefficients (VALU only).
    p = jnp.full_like(r, _P_COEFS[-1])
    for coef in _P_COEFS[-2::-1]:
        p = p * r + coef
    num = _LANCZOS_COEFS[0] * den + r * p
    return num, den


def _nb_loss_tile(a, mu, theta):
    """Elementwise NB loss on one VMEM tile (float32)."""
    theta = jnp.minimum(theta, _THETA_MAX)
    mu = mu * _SCALE_FACTOR
    th_e = theta + _EPS

    # t1 = lgamma(theta+eps) + lgamma(a+1) - lgamma(a+theta+eps)
    # (lgamma(a+1) is specialized: zm1 = a directly.)
    num_t, den_t = _lanczos_parts(th_e - 1.0)        # lgamma(theta + eps)
    num_a, den_a = _lanczos_parts(a)                 # lgamma(a + 1)
    num_b, den_b = _lanczos_parts(a + th_e - 1.0)    # lgamma(a + theta + eps)
    log_series = jnp.log((num_t * num_a * den_b) / (den_t * den_a * num_b))

    t1 = ((th_e - 0.5) * jnp.log(th_e + 6.5)
          + (a + 0.5) * jnp.log(a + 7.5)
          - (a + th_e - 0.5) * jnp.log(a + th_e + 6.5)
          + log_series + _LGAMMA_CONST)

    # t2 = (theta+a)*log(1 + mu/(theta+eps)) + a*(log(theta+eps)-log(mu+eps))
    #    = (theta+a)*log(theta+mu+eps) - theta*log(theta+eps) - a*log(mu+eps)
    t2 = ((theta + a) * jnp.log(theta + mu + _EPS)
          - theta * jnp.log(th_e)
          - a * jnp.log(mu + _EPS))

    out = t1 + t2
    # torch.nan_to_num(x, nan=0): NaN -> 0, +inf -> finfo.max, -inf -> finfo.min
    finfo = jnp.finfo(out.dtype)
    out = jnp.where(jnp.isnan(out), jnp.zeros_like(out), out)
    out = jnp.where(out == jnp.inf, jnp.full_like(out, finfo.max), out)
    out = jnp.where(out == -jnp.inf, jnp.full_like(out, finfo.min), out)
    return out


def _nb_loss_kernel(a_ref, mu_ref, theta_ref, out_ref):
    out_ref[...] = _nb_loss_tile(a_ref[...], mu_ref[...], theta_ref[...])


def _make_sum_kernel(B, G, bm, bn):
    needs_mask = (B % bm != 0) or (G % bn != 0)

    def kernel(a_ref, mu_ref, theta_ref, acc_ref):
        i = pl.program_id(0)
        j = pl.program_id(1)

        @pl.when(jnp.logical_and(i == 0, j == 0))
        def _():
            acc_ref[...] = jnp.zeros_like(acc_ref)

        tile = _nb_loss_tile(a_ref[...], mu_ref[...], theta_ref[...])
        if needs_mask:  # static: only traced when ragged edge tiles exist
            ri = jax.lax.broadcasted_iota(jnp.int32, (bm, bn), 0) + i * bm
            ci = jax.lax.broadcasted_iota(jnp.int32, (bm, bn), 1) + j * bn
            tile = jnp.where(jnp.logical_and(ri < B, ci < G), tile, 0.0)
        acc_ref[...] += jnp.sum(tile, axis=0, keepdims=True)

    return kernel


# Default tile: (256, 512) f32 = 512 KiB per operand; 4 operands x 2 pipeline
# buffers ~= 4 MiB, safe under the scoped-VMEM defaults of v5e/v6e/v7x.
# (Can be raised per-generation, e.g. (512, 1024) on v6e, if desired.)
_BM = 256
_BN = 512


@functools.partial(jax.jit, static_argnames=("reduction",))
def nb_loss(A, mu, theta, reduction="none"):
    assert A.shape == mu.shape == theta.shape and A.ndim == 2
    A = A.astype(jnp.float32)
    mu = mu.astype(jnp.float32)
    theta = theta.astype(jnp.float32)

    B, G = A.shape
    bm = min(_BM, B)
    bn = min(_BN, G)
    grid = (pl.cdiv(B, bm), pl.cdiv(G, bn))
    in_spec = pl.BlockSpec((bm, bn), lambda i, j: (i, j))

    if reduction == "none":
        return pl.pallas_call(
            _nb_loss_kernel,
            out_shape=jax.ShapeDtypeStruct((B, G), jnp.float32),
            grid=grid,
            in_specs=[in_spec, in_spec, in_spec],
            out_specs=pl.BlockSpec((bm, bn), lambda i, j: (i, j)),
            compiler_params=pltpu.CompilerParams(
                dimension_semantics=("parallel", "parallel")),
        )(A, mu, theta)

    if reduction in ("sum", "mean"):
        # Fused reduction: only a (1, bn) accumulator ever returns to HBM.
        partial = pl.pallas_call(
            _make_sum_kernel(B, G, bm, bn),
            out_shape=jax.ShapeDtypeStruct((1, bn), jnp.float32),
            grid=grid,
            in_specs=[in_spec, in_spec, in_spec],
            out_specs=pl.BlockSpec((1, bn), lambda i, j: (0, 0)),
            compiler_params=pltpu.CompilerParams(
                dimension_semantics=("arbitrary", "arbitrary")),
        )(A, mu, theta)
        total = jnp.sum(partial)
        return total / (B * G) if reduction == "mean" else total

    raise NotImplementedError(
        "Reduction methods: {} is not implemented.".format(reduction))


def _nb_loss_ref(A, mu, theta):
    """Pure-JAX reference (jax.scipy gammaln, literal PyTorch formula)."""
    from jax.scipy.special import gammaln
    theta = jnp.minimum(theta, _THETA_MAX)
    mu = mu * _SCALE_FACTOR
    t1 = gammaln(theta + _EPS) + gammaln(A + 1.0) - gammaln(A + theta + _EPS)
    t2 = ((theta + A) * jnp.log(1.0 + mu / (theta + _EPS))
          + A * (jnp.log(theta + _EPS) - jnp.log(mu + _EPS)))
    return jnp.nan_to_num(t1 + t2, nan=0.0)


if __name__ == "__main__":
    key = jax.random.PRNGKey(0)
    kA, kmu, kth = jax.random.split(key, 3)

    B, G = 16, 256  # (batch, genes)
    # A: nonnegative "count" data, mu/theta: positive NB parameters.
    A = jnp.floor(jax.random.uniform(kA, (B, G), jnp.float32, 0.0, 12.0))
    mu = jax.random.uniform(kmu, (B, G), jnp.float32, 0.05, 8.0)
    theta = jax.random.uniform(kth, (B, G), jnp.float32, 0.2, 15.0)

    ref = _nb_loss_ref(A, mu, theta)

    out = jax.block_until_ready(nb_loss(A, mu, theta, reduction="none"))
    assert out.shape == (B, G)
    assert jnp.allclose(out, ref, rtol=1e-3, atol=1e-3), "elementwise mismatch"

    out_sum = jax.block_until_ready(nb_loss(A, mu, theta, reduction="sum"))
    assert jnp.allclose(out_sum, jnp.sum(ref), rtol=1e-3), "fused sum mismatch"

    out_mean = jax.block_until_ready(nb_loss(A, mu, theta, reduction="mean"))
    assert jnp.allclose(out_mean, jnp.mean(ref), rtol=1e-3), "fused mean mismatch"

    print("KERNEL_OK")
</pallas_src>

<mosaic_0001>
module attributes {stable_mosaic.version = 11 : i64} {
  func.func @_nb_loss_kernel(%arg0: i32, %arg1: i32, %arg2: memref<16x256xf32, #tpu.memory_space<vmem>>, %arg3: memref<16x256xf32, #tpu.memory_space<vmem>>, %arg4: memref<16x256xf32, #tpu.memory_space<vmem>>, %arg5: memref<16x256xf32, #tpu.memory_space<vmem>>) attributes {dimension_semantics = [#tpu.dimension_semantics<parallel>, #tpu.dimension_semantics<parallel>], iteration_bounds = array<i64: 1, 1>, scalar_prefetch = 0 : i64, scratch_operands = 0 : i64, tpu.core_type = #tpu.core_type<tc>, window_params = [{transform_indices = @transform_0, window_bounds = array<i64: 16, 256>}, {transform_indices = @transform_1, window_bounds = array<i64: 16, 256>}, {transform_indices = @transform_2, window_bounds = array<i64: 16, 256>}, {transform_indices = @transform_3, window_bounds = array<i64: 16, 256>}]} {
    %c0 = arith.constant 0 : index
    %c0_0 = arith.constant 0 : index
    %0 = vector.load %arg2[%c0, %c0_0] : memref<16x256xf32, #tpu.memory_space<vmem>>, vector<16x256xf32>
    %c0_1 = arith.constant 0 : index
    %c0_2 = arith.constant 0 : index
    %1 = vector.load %arg3[%c0_1, %c0_2] : memref<16x256xf32, #tpu.memory_space<vmem>>, vector<16x256xf32>
    %c0_3 = arith.constant 0 : index
    %c0_4 = arith.constant 0 : index
    %2 = vector.load %arg4[%c0_3, %c0_4] : memref<16x256xf32, #tpu.memory_space<vmem>>, vector<16x256xf32>
    %cst = arith.constant 1.000000e+06 : f32
    %3 = vector.broadcast %cst : f32 to vector<16x256xf32>
    %4 = arith.minimumf %2, %3 : vector<16x256xf32>
    %cst_5 = arith.constant 1.000000e+00 : f32
    %5 = vector.broadcast %cst_5 : f32 to vector<16x256xf32>
    %6 = arith.mulf %1, %5 : vector<16x256xf32>
    %cst_6 = arith.constant 1.000000e-10 : f32
    %7 = vector.broadcast %cst_6 : f32 to vector<16x256xf32>
    %8 = arith.addf %4, %7 : vector<16x256xf32>
    %cst_7 = arith.constant 1.000000e+00 : f32
    %9 = vector.broadcast %cst_7 : f32 to vector<16x256xf32>
    %10 = arith.subf %8, %9 : vector<16x256xf32>
    %cst_8 = arith.constant 8.000000e+00 : f32
    %11 = vector.broadcast %cst_8 : f32 to vector<16x256xf32>
    %12 = arith.addf %10, %11 : vector<16x256xf32>
    %cst_9 = arith.constant 1.000000e+00 : f32
    %13 = vector.broadcast %cst_9 : f32 to vector<16x256xf32>
    %14 = arith.divf %13, %12 : vector<16x256xf32>
    %cst_10 = arith.constant 1.000000e+00 : f32
    %15 = vector.broadcast %cst_10 : f32 to vector<16x256xf32>
    %16 = arith.subf %15, %14 : vector<16x256xf32>
    %cst_11 = arith.constant 2.000000e+00 : f32
    %17 = vector.broadcast %cst_11 : f32 to vector<16x256xf32>
    %18 = arith.mulf %17, %14 : vector<16x256xf32>
    %cst_12 = arith.constant 1.000000e+00 : f32
    %19 = vector.broadcast %cst_12 : f32 to vector<16x256xf32>
    %20 = arith.subf %19, %18 : vector<16x256xf32>
    %21 = arith.mulf %16, %20 : vector<16x256xf32>
    %cst_13 = arith.constant 3.000000e+00 : f32
    %22 = vector.broadcast %cst_13 : f32 to vector<16x256xf32>
    %23 = arith.mulf %22, %14 : vector<16x256xf32>
    %cst_14 = arith.constant 1.000000e+00 : f32
    %24 = vector.broadcast %cst_14 : f32 to vector<16x256xf32>
    %25 = arith.subf %24, %23 : vector<16x256xf32>
    %26 = arith.mulf %21, %25 : vector<16x256xf32>
    %cst_15 = arith.constant 4.000000e+00 : f32
    %27 = vector.broadcast %cst_15 : f32 to vector<16x256xf32>
    %28 = arith.mulf %27, %14 : vector<16x256xf32>
    %cst_16 = arith.constant 1.000000e+00 : f32
    %29 = vector.broadcast %cst_16 : f32 to vector<16x256xf32>
    %30 = arith.subf %29, %28 : vector<16x256xf32>
    %31 = arith.mulf %26, %30 : vector<16x256xf32>
    %cst_17 = arith.constant 5.000000e+00 : f32
    %32 = vector.broadcast %cst_17 : f32 to vector<16x256xf32>
    %33 = arith.mulf %32, %14 : vector<16x256xf32>
    %cst_18 = arith.constant 1.000000e+00 : f32
    %34 = vector.broadcast %cst_18 : f32 to vector<16x256xf32>
    %35 = arith.subf %34, %33 : vector<16x256xf32>
    %36 = arith.mulf %31, %35 : vector<16x256xf32>
    %cst_19 = arith.constant 6.000000e+00 : f32
    %37 = vector.broadcast %cst_19 : f32 to vector<16x256xf32>
    %38 = arith.mulf %37, %14 : vector<16x256xf32>
    %cst_20 = arith.constant 1.000000e+00 : f32
    %39 = vector.broadcast %cst_20 : f32 to vector<16x256xf32>
    %40 = arith.subf %39, %38 : vector<16x256xf32>
    %41 = arith.mulf %36, %40 : vector<16x256xf32>
    %cst_21 = arith.constant 7.000000e+00 : f32
    %42 = vector.broadcast %cst_21 : f32 to vector<16x256xf32>
    %43 = arith.mulf %42, %14 : vector<16x256xf32>
    %cst_22 = arith.constant 1.000000e+00 : f32
    %44 = vector.broadcast %cst_22 : f32 to vector<16x256xf32>
    %45 = arith.subf %44, %43 : vector<16x256xf32>
    %46 = arith.mulf %41, %45 : vector<16x256xf32>
    %cst_23 = arith.constant -7.58838898E-4 : f32
    %47 = vector.broadcast %cst_23 : f32 to vector<16x256xf32>
    %48 = arith.mulf %47, %14 : vector<16x256xf32>
    %cst_24 = arith.constant 5039.99219 : f32
    %49 = vector.broadcast %cst_24 : f32 to vector<16x256xf32>
    %50 = arith.addf %48, %49 : vector<16x256xf32>
    %51 = arith.mulf %50, %14 : vector<16x256xf32>
    %cst_25 = arith.constant -13067.8828 : f32
    %52 = vector.broadcast %cst_25 : f32 to vector<16x256xf32>
    %53 = arith.addf %51, %52 : vector<16x256xf32>
    %54 = arith.mulf %53, %14 : vector<16x256xf32>
    %cst_26 = arith.constant 13131.3066 : f32
    %55 = vector.broadcast %cst_26 : f32 to vector<16x256xf32>
    %56 = arith.addf %54, %55 : vector<16x256xf32>
    %57 = arith.mulf %56, %14 : vector<16x256xf32>
    %cst_27 = arith.constant -6766.71094 : f32
    %58 = vector.broadcast %cst_27 : f32 to vector<16x256xf32>
    %59 = arith.addf %57, %58 : vector<16x256xf32>
    %60 = arith.mulf %59, %14 : vector<16x256xf32>
    %cst_28 = arith.constant 1955.46899 : f32
    %61 = vector.broadcast %cst_28 : f32 to vector<16x256xf32>
    %62 = arith.addf %60, %61 : vector<16x256xf32>
    %63 = arith.mulf %62, %14 : vector<16x256xf32>
    %cst_29 = arith.constant -316.624146 : f32
    %64 = vector.broadcast %cst_29 : f32 to vector<16x256xf32>
    %65 = arith.addf %63, %64 : vector<16x256xf32>
    %66 = arith.mulf %65, %14 : vector<16x256xf32>
    %cst_30 = arith.constant 24.458334 : f32
    %67 = vector.broadcast %cst_30 : f32 to vector<16x256xf32>
    %68 = arith.addf %66, %67 : vector<16x256xf32>
    %cst_31 = arith.constant 1.000000e+00 : f32
    %69 = vector.broadcast %cst_31 : f32 to vector<16x256xf32>
    %70 = arith.mulf %69, %46 : vector<16x256xf32>
    %71 = arith.mulf %14, %68 : vector<16x256xf32>
    %72 = arith.addf %70, %71 : vector<16x256xf32>
    %cst_32 = arith.constant 8.000000e+00 : f32
    %73 = vector.broadcast %cst_32 : f32 to vector<16x256xf32>
    %74 = arith.addf %0, %73 : vector<16x256xf32>
    %cst_33 = arith.constant 1.000000e+00 : f32
    %75 = vector.broadcast %cst_33 : f32 to vector<16x256xf32>
    %76 = arith.divf %75, %74 : vector<16x256xf32>
    %cst_34 = arith.constant 1.000000e+00 : f32
    %77 = vector.broadcast %cst_34 : f32 to vector<16x256xf32>
    %78 = arith.subf %77, %76 : vector<16x256xf32>
    %cst_35 = arith.constant 2.000000e+00 : f32
    %79 = vector.broadcast %cst_35 : f32 to vector<16x256xf32>
    %80 = arith.mulf %79, %76 : vector<16x256xf32>
    %cst_36 = arith.constant 1.000000e+00 : f32
    %81 = vector.broadcast %cst_36 : f32 to vector<16x256xf32>
    %82 = arith.subf %81, %80 : vector<16x256xf32>
    %83 = arith.mulf %78, %82 : vector<16x256xf32>
    %cst_37 = arith.constant 3.000000e+00 : f32
    %84 = vector.broadcast %cst_37 : f32 to vector<16x256xf32>
    %85 = arith.mulf %84, %76 : vector<16x256xf32>
    %cst_38 = arith.constant 1.000000e+00 : f32
    %86 = vector.broadcast %cst_38 : f32 to vector<16x256xf32>
    %87 = arith.subf %86, %85 : vector<16x256xf32>
    %88 = arith.mulf %83, %87 : vector<16x256xf32>
    %cst_39 = arith.constant 4.000000e+00 : f32
    %89 = vector.broadcast %cst_39 : f32 to vector<16x256xf32>
    %90 = arith.mulf %89, %76 : vector<16x256xf32>
    %cst_40 = arith.constant 1.000000e+00 : f32
    %91 = vector.broadcast %cst_40 : f32 to vector<16x256xf32>
    %92 = arith.subf %91, %90 : vector<16x256xf32>
    %93 = arith.mulf %88, %92 : vector<16x256xf32>
    %cst_41 = arith.constant 5.000000e+00 : f32
    %94 = vector.broadcast %cst_41 : f32 to vector<16x256xf32>
    %95 = arith.mulf %94, %76 : vector<16x256xf32>
    %cst_42 = arith.constant 1.000000e+00 : f32
    %96 = vector.broadcast %cst_42 : f32 to vector<16x256xf32>
    %97 = arith.subf %96, %95 : vector<16x256xf32>
    %98 = arith.mulf %93, %97 : vector<16x256xf32>
    %cst_43 = arith.constant 6.000000e+00 : f32
    %99 = vector.broadcast %cst_43 : f32 to vector<16x256xf32>
    %100 = arith.mulf %99, %76 : vector<16x256xf32>
    %cst_44 = arith.constant 1.000000e+00 : f32
    %101 = vector.broadcast %cst_44 : f32 to vector<16x256xf32>
    %102 = arith.subf %101, %100 : vector<16x256xf32>
    %103 = arith.mulf %98, %102 : vector<16x256xf32>
    %cst_45 = arith.constant 7.000000e+00 : f32
    %104 = vector.broadcast %cst_45 : f32 to vector<16x256xf32>
    %105 = arith.mulf %104, %76 : vector<16x256xf32>
    %cst_46 = arith.constant 1.000000e+00 : f32
    %106 = vector.broadcast %cst_46 : f32 to vector<16x256xf32>
    %107 = arith.subf %106, %105 : vector<16x256xf32>
    %108 = arith.mulf %103, %107 : vector<16x256xf32>
    %cst_47 = arith.constant -7.58838898E-4 : f32
    %109 = vector.broadcast %cst_47 : f32 to vector<16x256xf32>
    %110 = arith.mulf %109, %76 : vector<16x256xf32>
    %cst_48 = arith.constant 5039.99219 : f32
    %111 = vector.broadcast %cst_48 : f32 to vector<16x256xf32>
    %112 = arith.addf %110, %111 : vector<16x256xf32>
    %113 = arith.mulf %112, %76 : vector<16x256xf32>
    %cst_49 = arith.constant -13067.8828 : f32
    %114 = vector.broadcast %cst_49 : f32 to vector<16x256xf32>
    %115 = arith.addf %113, %114 : vector<16x256xf32>
    %116 = arith.mulf %115, %76 : vector<16x256xf32>
    %cst_50 = arith.constant 13131.3066 : f32
    %117 = vector.broadcast %cst_50 : f32 to vector<16x256xf32>
    %118 = arith.addf %116, %117 : vector<16x256xf32>
    %119 = arith.mulf %118, %76 : vector<16x256xf32>
    %cst_51 = arith.constant -6766.71094 : f32
    %120 = vector.broadcast %cst_51 : f32 to vector<16x256xf32>
    %121 = arith.addf %119, %120 : vector<16x256xf32>
    %122 = arith.mulf %121, %76 : vector<16x256xf32>
    %cst_52 = arith.constant 1955.46899 : f32
    %123 = vector.broadcast %cst_52 : f32 to vector<16x256xf32>
    %124 = arith.addf %122, %123 : vector<16x256xf32>
    %125 = arith.mulf %124, %76 : vector<16x256xf32>
    %cst_53 = arith.constant -316.624146 : f32
    %126 = vector.broadcast %cst_53 : f32 to vector<16x256xf32>
    %127 = arith.addf %125, %126 : vector<16x256xf32>
    %128 = arith.mulf %127, %76 : vector<16x256xf32>
    %cst_54 = arith.constant 24.458334 : f32
    %129 = vector.broadcast %cst_54 : f32 to vector<16x256xf32>
    %130 = arith.addf %128, %129 : vector<16x256xf32>
    %cst_55 = arith.constant 1.000000e+00 : f32
    %131 = vector.broadcast %cst_55 : f32 to vector<16x256xf32>
    %132 = arith.mulf %131, %108 : vector<16x256xf32>
    %133 = arith.mulf %76, %130 : vector<16x256xf32>
    %134 = arith.addf %132, %133 : vector<16x256xf32>
    %135 = arith.addf %0, %8 : vector<16x256xf32>
    %cst_56 = arith.constant 1.000000e+00 : f32
    %136 = vector.broadcast %cst_56 : f32 to vector<16x256xf32>
    %137 = arith.subf %135, %136 : vector<16x256xf32>
    %cst_57 = arith.constant 8.000000e+00 : f32
    %138 = vector.broadcast %cst_57 : f32 to vector<16x256xf32>
    %139 = arith.addf %137, %138 : vector<16x256xf32>
    %cst_58 = arith.constant 1.000000e+00 : f32
    %140 = vector.broadcast %cst_58 : f32 to vector<16x256xf32>
    %141 = arith.divf %140, %139 : vector<16x256xf32>
    %cst_59 = arith.constant 1.000000e+00 : f32
    %142 = vector.broadcast %cst_59 : f32 to vector<16x256xf32>
    %143 = arith.subf %142, %141 : vector<16x256xf32>
    %cst_60 = arith.constant 2.000000e+00 : f32
    %144 = vector.broadcast %cst_60 : f32 to vector<16x256xf32>
    %145 = arith.mulf %144, %141 : vector<16x256xf32>
    %cst_61 = arith.constant 1.000000e+00 : f32
    %146 = vector.broadcast %cst_61 : f32 to vector<16x256xf32>
    %147 = arith.subf %146, %145 : vector<16x256xf32>
    %148 = arith.mulf %143, %147 : vector<16x256xf32>
    %cst_62 = arith.constant 3.000000e+00 : f32
    %149 = vector.broadcast %cst_62 : f32 to vector<16x256xf32>
    %150 = arith.mulf %149, %141 : vector<16x256xf32>
    %cst_63 = arith.constant 1.000000e+00 : f32
    %151 = vector.broadcast %cst_63 : f32 to vector<16x256xf32>
    %152 = arith.subf %151, %150 : vector<16x256xf32>
    %153 = arith.mulf %148, %152 : vector<16x256xf32>
    %cst_64 = arith.constant 4.000000e+00 : f32
    %154 = vector.broadcast %cst_64 : f32 to vector<16x256xf32>
    %155 = arith.mulf %154, %141 : vector<16x256xf32>
    %cst_65 = arith.constant 1.000000e+00 : f32
    %156 = vector.broadcast %cst_65 : f32 to vector<16x256xf32>
    %157 = arith.subf %156, %155 : vector<16x256xf32>
    %158 = arith.mulf %153, %157 : vector<16x256xf32>
    %cst_66 = arith.constant 5.000000e+00 : f32
    %159 = vector.broadcast %cst_66 : f32 to vector<16x256xf32>
    %160 = arith.mulf %159, %141 : vector<16x256xf32>
    %cst_67 = arith.constant 1.000000e+00 : f32
    %161 = vector.broadcast %cst_67 : f32 to vector<16x256xf32>
    %162 = arith.subf %161, %160 : vector<16x256xf32>
    %163 = arith.mulf %158, %162 : vector<16x256xf32>
    %cst_68 = arith.constant 6.000000e+00 : f32
    %164 = vector.broadcast %cst_68 : f32 to vector<16x256xf32>
    %165 = arith.mulf %164, %141 : vector<16x256xf32>
    %cst_69 = arith.constant 1.000000e+00 : f32
    %166 = vector.broadcast %cst_69 : f32 to vector<16x256xf32>
    %167 = arith.subf %166, %165 : vector<16x256xf32>
    %168 = arith.mulf %163, %167 : vector<16x256xf32>
    %cst_70 = arith.constant 7.000000e+00 : f32
    %169 = vector.broadcast %cst_70 : f32 to vector<16x256xf32>
    %170 = arith.mulf %169, %141 : vector<16x256xf32>
    %cst_71 = arith.constant 1.000000e+00 : f32
    %171 = vector.broadcast %cst_71 : f32 to vector<16x256xf32>
    %172 = arith.subf %171, %170 : vector<16x256xf32>
    %173 = arith.mulf %168, %172 : vector<16x256xf32>
    %cst_72 = arith.constant -7.58838898E-4 : f32
    %174 = vector.broadcast %cst_72 : f32 to vector<16x256xf32>
    %175 = arith.mulf %174, %141 : vector<16x256xf32>
    %cst_73 = arith.constant 5039.99219 : f32
    %176 = vector.broadcast %cst_73 : f32 to vector<16x256xf32>
    %177 = arith.addf %175, %176 : vector<16x256xf32>
    %178 = arith.mulf %177, %141 : vector<16x256xf32>
    %cst_74 = arith.constant -13067.8828 : f32
    %179 = vector.broadcast %cst_74 : f32 to vector<16x256xf32>
    %180 = arith.addf %178, %179 : vector<16x256xf32>
    %181 = arith.mulf %180, %141 : vector<16x256xf32>
    %cst_75 = arith.constant 13131.3066 : f32
    %182 = vector.broadcast %cst_75 : f32 to vector<16x256xf32>
    %183 = arith.addf %181, %182 : vector<16x256xf32>
    %184 = arith.mulf %183, %141 : vector<16x256xf32>
    %cst_76 = arith.constant -6766.71094 : f32
    %185 = vector.broadcast %cst_76 : f32 to vector<16x256xf32>
    %186 = arith.addf %184, %185 : vector<16x256xf32>
    %187 = arith.mulf %186, %141 : vector<16x256xf32>
    %cst_77 = arith.constant 1955.46899 : f32
    %188 = vector.broadcast %cst_77 : f32 to vector<16x256xf32>
    %189 = arith.addf %187, %188 : vector<16x256xf32>
    %190 = arith.mulf %189, %141 : vector<16x256xf32>
    %cst_78 = arith.constant -316.624146 : f32
    %191 = vector.broadcast %cst_78 : f32 to vector<16x256xf32>
    %192 = arith.addf %190, %191 : vector<16x256xf32>
    %193 = arith.mulf %192, %141 : vector<16x256xf32>
    %cst_79 = arith.constant 24.458334 : f32
    %194 = vector.broadcast %cst_79 : f32 to vector<16x256xf32>
    %195 = arith.addf %193, %194 : vector<16x256xf32>
    %cst_80 = arith.constant 1.000000e+00 : f32
    %196 = vector.broadcast %cst_80 : f32 to vector<16x256xf32>
    %197 = arith.mulf %196, %173 : vector<16x256xf32>
    %198 = arith.mulf %141, %195 : vector<16x256xf32>
    %199 = arith.addf %197, %198 : vector<16x256xf32>
    %200 = arith.mulf %72, %134 : vector<16x256xf32>
    %201 = arith.mulf %200, %173 : vector<16x256xf32>
    %202 = arith.mulf %46, %108 : vector<16x256xf32>
    %203 = arith.mulf %202, %199 : vector<16x256xf32>
    %204 = arith.divf %201, %203 : vector<16x256xf32>
    %205 = math.log %204 : vector<16x256xf32>
    %cst_81 = arith.constant 5.000000e-01 : f32
    %206 = vector.broadcast %cst_81 : f32 to vector<16x256xf32>
    %207 = arith.subf %8, %206 : vector<16x256xf32>
    %cst_82 = arith.constant 6.500000e+00 : f32
    %208 = vector.broadcast %cst_82 : f32 to vector<16x256xf32>
    %209 = arith.addf %8, %208 : vector<16x256xf32>
    %210 = math.log %209 : vector<16x256xf32>
    %211 = arith.mulf %207, %210 : vector<16x256xf32>
    %cst_83 = arith.constant 5.000000e-01 : f32
    %212 = vector.broadcast %cst_83 : f32 to vector<16x256xf32>
    %213 = arith.addf %0, %212 : vector<16x256xf32>
    %cst_84 = arith.constant 7.500000e+00 : f32
    %214 = vector.broadcast %cst_84 : f32 to vector<16x256xf32>
    %215 = arith.addf %0, %214 : vector<16x256xf32>
    %216 = math.log %215 : vector<16x256xf32>
    %217 = arith.mulf %213, %216 : vector<16x256xf32>
    %218 = arith.addf %211, %217 : vector<16x256xf32>
    %219 = arith.addf %0, %8 : vector<16x256xf32>
    %cst_85 = arith.constant 5.000000e-01 : f32
    %220 = vector.broadcast %cst_85 : f32 to vector<16x256xf32>
    %221 = arith.subf %219, %220 : vector<16x256xf32>
    %222 = arith.addf %0, %8 : vector<16x256xf32>
    %cst_86 = arith.constant 6.500000e+00 : f32
    %223 = vector.broadcast %cst_86 : f32 to vector<16x256xf32>
    %224 = arith.addf %222, %223 : vector<16x256xf32>
    %225 = math.log %224 : vector<16x256xf32>
    %226 = arith.mulf %221, %225 : vector<16x256xf32>
    %227 = arith.subf %218, %226 : vector<16x256xf32>
    %228 = arith.addf %227, %205 : vector<16x256xf32>
    %cst_87 = arith.constant -6.58106136 : f32
    %229 = vector.broadcast %cst_87 : f32 to vector<16x256xf32>
    %230 = arith.addf %228, %229 : vector<16x256xf32>
    %231 = arith.addf %4, %0 : vector<16x256xf32>
    %232 = arith.addf %4, %6 : vector<16x256xf32>
    %cst_88 = arith.constant 1.000000e-10 : f32
    %233 = vector.broadcast %cst_88 : f32 to vector<16x256xf32>
    %234 = arith.addf %232, %233 : vector<16x256xf32>
    %235 = math.log %234 : vector<16x256xf32>
    %236 = arith.mulf %231, %235 : vector<16x256xf32>
    %237 = math.log %8 : vector<16x256xf32>
    %238 = arith.mulf %4, %237 : vector<16x256xf32>
    %239 = arith.subf %236, %238 : vector<16x256xf32>
    %cst_89 = arith.constant 1.000000e-10 : f32
    %240 = vector.broadcast %cst_89 : f32 to vector<16x256xf32>
    %241 = arith.addf %6, %240 : vector<16x256xf32>
    %242 = math.log %241 : vector<16x256xf32>
    %243 = arith.mulf %0, %242 : vector<16x256xf32>
    %244 = arith.subf %239, %243 : vector<16x256xf32>
    %245 = arith.addf %230, %244 : vector<16x256xf32>
    %246 = arith.cmpf one, %245, %245 : vector<16x256xf32>
    %cst_90 = arith.constant 0.000000e+00 : f32
    %247 = vector.broadcast %cst_90 : f32 to vector<16x256xf32>
    %248 = arith.select %246, %247, %245 : vector<16x256xi1>, vector<16x256xf32>
    %cst_91 = arith.constant 0x7F800000 : f32
    %249 = vector.broadcast %cst_91 : f32 to vector<16x256xf32>
    %250 = arith.cmpf oeq, %248, %249 : vector<16x256xf32>
    %cst_92 = arith.constant 3.40282347E+38 : f32
    %251 = vector.broadcast %cst_92 : f32 to vector<16x256xf32>
    %252 = arith.select %250, %251, %248 : vector<16x256xi1>, vector<16x256xf32>
    %cst_93 = arith.constant 0xFF800000 : f32
    %253 = vector.broadcast %cst_93 : f32 to vector<16x256xf32>
    %254 = arith.cmpf oeq, %252, %253 : vector<16x256xf32>
    %cst_94 = arith.constant -3.40282347E+38 : f32
    %255 = vector.broadcast %cst_94 : f32 to vector<16x256xf32>
    %256 = arith.select %254, %255, %252 : vector<16x256xi1>, vector<16x256xf32>
    %c0_95 = arith.constant 0 : index
    %c0_96 = arith.constant 0 : index
    %257 = vector.load %arg5[%c0_95, %c0_96] : memref<16x256xf32, #tpu.memory_space<vmem>>, vector<16x256xf32>
    tpu.vector_store %arg5[%c0_95, %c0_96], %256 {strides = array<i32>} : memref<16x256xf32, #tpu.memory_space<vmem>>, vector<16x256xf32>,
    return
  }
  func.func @transform_0(%arg0: i32, %arg1: i32) -> (i32, i32) {
    %c0_i32 = arith.constant 0 : i32
    return %arg0, %arg1 : i32, i32
  }
  func.func @transform_1(%arg0: i32, %arg1: i32) -> (i32, i32) {
    %c0_i32 = arith.constant 0 : i32
    return %arg0, %arg1 : i32, i32
  }
  func.func @transform_2(%arg0: i32, %arg1: i32) -> (i32, i32) {
    %c0_i32 = arith.constant 0 : i32
    return %arg0, %arg1 : i32, i32
  }
  func.func @transform_3(%arg0: i32, %arg1: i32) -> (i32, i32) {
    %c0_i32 = arith.constant 0 : i32
    return %arg0, %arg1 : i32, i32
  }
}

</mosaic_0001>

<bundles_post_ra>
// kernel: nb_loss.1
= control target key start
LH: loop header
LB: loop body
LE: loop exit
PB: predicated region body
PF: predicated region fallthrough
CT: control target
= control target key end

     0   :  { %8 = vsyncpa [#allocation3], 0  ;;  %s2084_s0 = inlined_call_operand.hbm [shape: f32[16,256], index: 0, kind: input, shape index: {}]   ;;  %s2085_s1 = inlined_call_operand.hbm [shape: f32[16,256], index: 1, kind: input, shape index: {}]   ;;  %s2086_s2 = inlined_call_operand.hbm [shape: f32[16,256], index: 2, kind: input, shape index: {}]   ;;  %s2087_s3 = inlined_call_operand.hbm [shape: f32[16,256], index: 3, kind: output, shape index: {}]  }
   0x1   :  { %9 = vsyncpa [#allocation6], 0 }
   0x2   :  { %10 = vsyncpa [#allocation4], 0  ;;  %s28_s14 = sshll.u32 %s2085_s1, 4  ;;  %s1194_s15 = smov [#allocation5]   ;;  %s29_s14 = int_to_ptr.hbm [resolvable:$true] %s28_s14 }
   0x3   :  { %s30_s16 = sshll.u32 %s1194_s15, 4  ;;  %s15_s19 = sshll.u32 %s2084_s0, 4  ;;  %s31_s16 = int_to_ptr.vmem [resolvable:$true] %s30_s16  ;;  %s16_s19 = int_to_ptr.hbm [resolvable:$true] %s15_s19 }
   0x4   :  { %s1195_s20 = smov 256   ;;  %s1196_s21 = smov 16  }
   0x5   :  { %36 = dma.hbm_to_vmem [thread:$0]  %s29_s14, 512, %s31_s16, [#allocation6], %s1195_s20, %s1195_s20, %s1196_s21  }
   0x6   :  { %s1197_s22 = smov [#allocation2]   ;;  %s41_s1 = sshll.u32 %s2086_s2, 4  ;;  %s42_s1 = int_to_ptr.hbm [resolvable:$true] %s41_s1 }
   0x7   :  { %s17_s23 = sshll.u32 %s1197_s22, 4  ;;  %s1198_s0 = smov [#allocation7]   ;;  %s18_s23 = int_to_ptr.vmem [resolvable:$true] %s17_s23 }
   0x8   :  { %23 = dma.hbm_to_vmem [thread:$0]  %s16_s19, 512, %s18_s23, [#allocation3], %s1195_s20, %s1195_s20, %s1196_s21  }
   0x9   :  { %s43_s26 = sshll.u32 %s1198_s0, 4  ;;  %s44_s26 = int_to_ptr.vmem [resolvable:$true] %s43_s26 }
   0xa   :  { %49 = dma.hbm_to_vmem [thread:$0]  %s42_s1, 512, %s44_s26, [#allocation6], %s1195_s20, %s1195_s20, %s1196_s21  }
   0xb   :  { %1188 = dma.done.wait [#allocation3], 512  }
   0xc   :  { %1189 = vsyncadd [#allocation3], 4294966784 }
   0xd   :  { %1190 = dma.done.wait [#allocation6], 1024  }
   0xe   :  { %1191 = vsyncadd [#allocation6], 4294966272  ;;  %v1238_v0 = vld [vmem:[#allocation2] sm:$0xff]  ;;  %v71_v2 = vld [vmem:[#allocation7 + $0x8] sm:$0xff]  ;;  %s1199_s2 = smov [#allocation8]   ;;  %s964_s30 = sshll.u32 %s2087_s3, 4  ;;  %s965_s30 = int_to_ptr.hbm [resolvable:$true] %s964_s30 }
   0xf   :  { %v70_v1 = vld [vmem:[#allocation7] sm:$0xff]  ;;  %v72_v3 = vld [vmem:[#allocation7 + $0x10] sm:$0xff]  ;;  %v73_v4 = vld [vmem:[#allocation7 + $0x18] sm:$0xff]  ;;  %v1243_v6 = vadd.f32 8.0, %v1238_v0  ;;  %v1245_v7 = vmin.f32 %v71_v2, 1000000.0 }
  0x10   :  { %v1240_v5 = vmin.f32 %v70_v1, 1000000.0  ;;  %v1247_v8 = vmin.f32 %v72_v3, 1000000.0  ;;  %v1249_v9 = vmin.f32 %v73_v4, 1000000.0 }
  0x11   :  { %v1255_v11 = vadd.f32 1e-10, %v1245_v7  ;;  %1000 = vrcp.f32 %v1243_v6  ;;  %v1270_v22 = vld [vmem:[#allocation2 + $0x8] sm:$0xff]  ;;  %v1320_v3 = vld [vmem:[#allocation2 + $0x10] sm:$0xff]  ;;  %s962_s27 = sshll.u32 %s1199_s2, 4  ;;  %s963_s27 = int_to_ptr.vmem [resolvable:$true] %s962_s27 }
  0x12   :  { %v1252_v10 = vadd.f32 1e-10, %v1240_v5  ;;  %v1258_v12 = vadd.f32 1e-10, %v1247_v8  ;;  %v1261_v13 = vadd.f32 1e-10, %v1249_v9 }
  0x13   :  { %v979_v15 = vadd.f32 -1.0, %v1255_v11  ;;  %v1273_v23 = vadd.f32 8.0, %v1270_v22 }
  0x14   :  { %2091 = vst [vmem:[#allocation12_spill] sm:$0xff] %v1261_v13  ;;  %v978_v14 = vadd.f32 -1.0, %v1252_v10  ;;  %v980_v16 = vadd.f32 -1.0, %v1258_v12  ;;  %v981_v17 = vadd.f32 -1.0, %v1261_v13 }
  0x15   :  { %v87_v19 = vadd.f32 8.0, %v979_v15  ;;  %v1324_v15 = vld [vmem:[#allocation2 + $0x18] sm:$0xff] }
  0x16   :  { %v86_v18 = vadd.f32 8.0, %v978_v14  ;;  %v88_v20 = vadd.f32 8.0, %v980_v16  ;;  %v1268_v21 = vadd.f32 8.0, %v981_v17 }
  0x17   :  { %v1275_v24 = vpop.eup %1000  ;;  %vm110_vm1 = vweird.f32 %v87_v19  ;;  %v114_v34 = vand.u32 2147483647, %v87_v19  ;;  %v116_v35 = vand.u32 2147483648, %v87_v19 }
  0x18   :  { %1002 = vrcp.f32 %v86_v18  ;;  %v99_v25 = vand.u32 2147483647, %v86_v18  ;;  %v1280_v27 = vmul.f32 %v1275_v24, %v1243_v6  ;;  %vm95_vm0 = vweird.f32 %v86_v18 }
  0x19   :  { %1004 = vrcp.f32 %v87_v19  ;;  %v101_v30 = vand.u32 2147483648, %v86_v18  ;;  %vm125_vm4 = vweird.f32 %v88_v20  ;;  %v129_v40 = vand.u32 2147483647, %v88_v20 }
  0x1a   :  { %1006 = vrcp.f32 %v88_v20  ;;  %vm1283_vm2 = vcmp.eq.f32.partialorder %v99_v25, 8.507059e+37  ;;  %v131_v41 = vand.u32 2147483648, %v88_v20  ;;  %vm140_vm8 = vweird.f32 %v1268_v21 }
  0x1b   :  { %1008 = vrcp.f32 %v1268_v21  ;;  %v144_v48 = vand.u32 2147483647, %v1268_v21  ;;  %v146_v49 = vand.u32 2147483648, %v1268_v21  ;;  %v102_v54 = vor.u32 1.1754944e-38, %v101_v30 }
  0x1c   :  { %1010 = vrcp.f32 %v1273_v23  ;;  %vm1303_vm11 = vcmp.eq.f32.partialorder %v114_v34, 8.507059e+37  ;;  %v117_v57 = vor.u32 1.1754944e-38, %v116_v35  ;;  %v132_v61 = vor.u32 1.1754944e-38, %v131_v41 }
  0x1d   :  { %vm130_vm13 = vcmp.eq.f32.partialorder %v129_v40, 8.507059e+37  ;;  %v147_v1 = vor.u32 1.1754944e-38, %v146_v49  ;;  %v296_v2 = vsub.f32 1.0, %v1280_v27  ;;  %vm145_vm15 = vcmp.eq.f32.partialorder %v144_v48, 8.507059e+37 }
  0x1e   :  { %v1003_v26 = vpop.eup %1002  ;;  %v303_v27 = vand.u32 2147483647, %v1243_v6 }
  0x1f   :  { %v1005_v28 = vpop.eup %1004  ;;  %v91_v29 = vmul.f32 %v1003_v26, %v86_v18  ;;  %vm96_vm3 = vweird.f32 %v1003_v26  ;;  %v1335_v18 = vadd.f32 8.0, %v1320_v3 }
  0x20   :  { %v1007_v31 = vpop.eup %1006  ;;  %v106_v33 = vmul.f32 %v1005_v28, %v87_v19  ;;  %vm111_vm5 = vweird.f32 %v1005_v28  ;;  %vm1291_vm7 = vmor %vm95_vm0, %vm96_vm3  ;;  %vm299_vm0 = vweird.f32 %v1243_v6 }
  0x21   :  { %v92_v36 = vsub.f32 1.0, %v91_v29  ;;  %v121_v37 = vmul.f32 %v1007_v31, %v88_v20  ;;  %v1009_v38 = vpop.eup %1008  ;;  %vm126_vm6 = vweird.f32 %v1007_v31  ;;  %vm1299_vm9 = vmor %vm110_vm1, %vm111_vm5  ;;  %vm300_vm1 = vweird.f32 %v1275_v24 }
  0x22   :  { %v107_v39 = vsub.f32 1.0, %v106_v33  ;;  %v136_v44 = vmul.f32 %v1009_v38, %v1268_v21  ;;  %v1288_v45 = vpop.eup %1010  ;;  %vm141_vm10 = vweird.f32 %v1009_v38  ;;  %vm1309_vm12 = vmor %vm125_vm4, %vm126_vm6  ;;  %v1340_v21 = vadd.f32 8.0, %v1324_v15 }
  0x23   :  { %v93_v42 = vmul.f32 %v1003_v26, %v92_v36  ;;  %v122_v43 = vsub.f32 1.0, %v121_v37  ;;  %vm142_vm14 = vmor %vm140_vm8, %vm141_vm10  ;;  %1012 = vrcp.f32 %v1335_v18  ;;  %v305_v33 = vand.u32 2147483648, %v1243_v6 }
  0x24   :  { %v108_v47 = vmul.f32 %v1005_v28, %v107_v39  ;;  %v137_v53 = vsub.f32 1.0, %v136_v44  ;;  %1014 = vrcp.f32 %v1340_v21  ;;  %vm1365_vm3 = vmor %vm299_vm0, %vm300_vm1  ;;  %vm314_vm4 = vweird.f32 %v1273_v23 }
  0x25   :  { %v94_v50 = vadd.f32 %v1003_v26, %v93_v42  ;;  %v123_v52 = vmul.f32 %v1007_v31, %v122_v43  ;;  %vm315_vm5 = vweird.f32 %v1288_v45  ;;  %vm329_vm8 = vweird.f32 %v1335_v18 }
  0x26   :  { %v109_v55 = vadd.f32 %v1005_v28, %v108_v47  ;;  %v138_v62 = vmul.f32 %v1009_v38, %v137_v53  ;;  %vm1403_vm6 = vmor %vm314_vm4, %vm315_vm5  ;;  %vm344_vm10 = vweird.f32 %v1340_v21 }
  0x27   :  { %v98_v59 = vsel %vm1291_vm7, %v1003_v26, %v94_v50  ;;  %v124_v60 = vadd.f32 %v1007_v31, %v123_v52  ;;  %v297_v26 = vmul.f32 %v1275_v24, %v296_v2  ;;  %v306_v50 = vor.u32 1.1754944e-38, %v305_v33 }
  0x28   :  { %v113_v63 = vsel %vm1299_vm9, %v1005_v28, %v109_v55  ;;  %v139_v14 = vadd.f32 %v1009_v38, %v138_v62  ;;  %v1328_v16 = vsel %vm1283_vm2, %v102_v54, %v98_v59  ;;  %v310_v28 = vmul.f32 %v1288_v45, %v1273_v23 }
  0x29   :  { %v128_v4 = vsel %vm1309_vm12, %v1007_v31, %v124_v60  ;;  %v1332_v17 = vsel %vm1303_vm11, %v117_v57, %v113_v63  ;;  %v154_v29 = vmul.f32 2.0, %v1328_v16  ;;  %v150_v34 = vsub.f32 1.0, %v1328_v16  ;;  %v1374_v51 = vpop.eup %1012 }
  0x2a   :  { %v1337_v19 = vsel %vm130_vm13, %v132_v61, %v128_v4  ;;  %v143_v20 = vsel %vm142_vm14, %v1009_v38, %v139_v14  ;;  %v155_v30 = vmul.f32 2.0, %v1332_v17  ;;  %v298_v35 = vadd.f32 %v1275_v24, %v297_v26  ;;  %v1382_v54 = vpop.eup %1014 }
  0x2b   :  { %v1342_v25 = vsel %vm145_vm15, %v147_v1, %v143_v20  ;;  %v156_v31 = vmul.f32 2.0, %v1337_v19  ;;  %vm1359_vm2 = vcmp.eq.f32.partialorder %v303_v27, 8.507059e+37  ;;  %v311_v37 = vsub.f32 1.0, %v310_v28 }
  0x2c   :  { %v157_v32 = vmul.f32 2.0, %v1342_v25  ;;  %v151_v38 = vsub.f32 1.0, %v1332_v17  ;;  %v158_v39 = vsub.f32 1.0, %v154_v29  ;;  %v159_v40 = vsub.f32 1.0, %v155_v30 }
  0x2d   :  { %v166_v41 = vmul.f32 3.0, %v1328_v16  ;;  %v152_v6 = vsub.f32 1.0, %v1337_v19  ;;  %v160_v43 = vsub.f32 1.0, %v156_v31  ;;  %v167_v44 = vmul.f32 3.0, %v1332_v17 }
  0x2e   :  { %v168_v46 = vmul.f32 3.0, %v1337_v19  ;;  %v153_v47 = vsub.f32 1.0, %v1342_v25  ;;  %v161_v48 = vsub.f32 1.0, %v157_v32  ;;  %v169_v49 = vmul.f32 3.0, %v1342_v25 }
  0x2f   :  { %v302_v52 = vsel %vm1365_vm3, %v1275_v24, %v298_v35  ;;  %v312_v53 = vmul.f32 %v1288_v45, %v311_v37  ;;  %v162_v55 = vmul.f32 %v158_v39, %v150_v34  ;;  %v163_v56 = vmul.f32 %v159_v40, %v151_v38 }
  0x30   :  { %v170_v57 = vsub.f32 1.0, %v166_v41  ;;  %v178_v58 = vmul.f32 4.0, %v1328_v16  ;;  %v164_v59 = vmul.f32 %v160_v43, %v152_v6  ;;  %v171_v60 = vsub.f32 1.0, %v167_v44 }
  0x31   :  { %v172_v61 = vsub.f32 1.0, %v168_v46  ;;  %v179_v62 = vmul.f32 4.0, %v1332_v17  ;;  %v165_v63 = vmul.f32 %v161_v48, %v153_v47  ;;  %v173_v24 = vsub.f32 1.0, %v169_v49 }
  0x32   :  { %v180_v1 = vmul.f32 4.0, %v1337_v19  ;;  %v181_v2 = vmul.f32 4.0, %v1342_v25  ;;  %v1390_v4 = vsel %vm1359_vm2, %v306_v50, %v302_v52  ;;  %v1393_v14 = vadd.f32 %v1288_v45, %v312_v53 }
  0x33   :  { %v318_v20 = vand.u32 2147483647, %v1273_v23  ;;  %v320_v26 = vand.u32 2147483648, %v1273_v23  ;;  %v174_v27 = vmul.f32 %v170_v57, %v162_v55  ;;  %v182_v28 = vsub.f32 1.0, %v178_v58 }
  0x34   :  { %v190_v29 = vmul.f32 5.0, %v1328_v16  ;;  %v191_v30 = vmul.f32 5.0, %v1332_v17  ;;  %v175_v32 = vmul.f32 %v171_v60, %v163_v56  ;;  %v176_v33 = vmul.f32 %v172_v61, %v164_v59 }
  0x35   :  { %v183_v34 = vsub.f32 1.0, %v179_v62  ;;  %v325_v35 = vmul.f32 %v1374_v51, %v1335_v18  ;;  %v177_v36 = vmul.f32 %v173_v24, %v165_v63  ;;  %v184_v37 = vsub.f32 1.0, %v180_v1 }
  0x36   :  { %v185_v38 = vsub.f32 1.0, %v181_v2  ;;  %v192_v39 = vmul.f32 5.0, %v1337_v19  ;;  %v193_v40 = vmul.f32 5.0, %v1342_v25  ;;  %v226_v41 = vmul.f32 -0.0007588389, %v1328_v16 }
  0x37   :  { %v227_v42 = vmul.f32 -0.0007588389, %v1332_v17  ;;  %v317_v6 = vsel %vm1403_vm6, %v1288_v45, %v1393_v14  ;;  %v186_v43 = vmul.f32 %v182_v28, %v174_v27  ;;  %v194_v44 = vsub.f32 1.0, %v190_v29 }
  0x38   :  { %v195_v46 = vsub.f32 1.0, %v191_v30  ;;  %v228_v47 = vmul.f32 -0.0007588389, %v1337_v19  ;;  %v187_v48 = vmul.f32 %v183_v34, %v175_v32  ;;  %v229_v49 = vmul.f32 -0.0007588389, %v1342_v25 }
  0x39   :  { %v230_v50 = vadd.f32 5039.992, %v226_v41  ;;  %v231_v52 = vadd.f32 5039.992, %v227_v42  ;;  %v188_v53 = vmul.f32 %v184_v37, %v176_v33  ;;  %v189_v55 = vmul.f32 %v185_v38, %v177_v36 }
  0x3a   :  { %v196_v56 = vsub.f32 1.0, %v192_v39  ;;  %v232_v57 = vadd.f32 5039.992, %v228_v47  ;;  %v197_v58 = vsub.f32 1.0, %v193_v40  ;;  %v233_v59 = vadd.f32 5039.992, %v229_v49 }
  0x3b   :  { %v234_v60 = vmul.f32 %v230_v50, %v1328_v16  ;;  %v235_v61 = vmul.f32 %v231_v52, %v1332_v17  ;;  %v1421_v62 = vmul.f32 %v194_v44, %v186_v43  ;;  %v1424_v63 = vmul.f32 6.0, %v1328_v16 }
  0x3c   :  { %v1427_v24 = vmul.f32 6.0, %v1332_v17  ;;  %v236_v1 = vmul.f32 %v232_v57, %v1337_v19  ;;  %v1430_v2 = vmul.f32 %v195_v46, %v187_v48  ;;  %v237_v27 = vmul.f32 %v233_v59, %v1342_v25 }
  0x3d   :  { %v238_v28 = vadd.f32 -13067.883, %v234_v60  ;;  %v239_v29 = vadd.f32 -13067.883, %v235_v61  ;;  %v1433_v30 = vmul.f32 %v196_v56, %v188_v53  ;;  %v326_v33 = vsub.f32 1.0, %v325_v35 }
  0x3e   :  { %v240_v32 = vadd.f32 -13067.883, %v236_v1  ;;  %v340_v34 = vmul.f32 %v1382_v54, %v1340_v21  ;;  %v1438_v36 = vmul.f32 6.0, %v1337_v19  ;;  %v241_v37 = vadd.f32 -13067.883, %v237_v27 }
  0x3f   :  { %v242_v38 = vmul.f32 %v238_v28, %v1328_v16  ;;  %v243_v39 = vmul.f32 %v239_v29, %v1332_v17  ;;  %v1442_v40 = vmul.f32 %v197_v58, %v189_v55  ;;  %v1445_v41 = vmul.f32 6.0, %v1342_v25 }
  0x40   :  { %v244_v42 = vmul.f32 %v240_v32, %v1337_v19  ;;  %v341_v43 = vsub.f32 1.0, %v340_v34  ;;  %v206_v35 = vsub.f32 1.0, %v1424_v63  ;;  %v245_v44 = vmul.f32 %v241_v37, %v1342_v25 }
  0x41   :  { %v246_v46 = vadd.f32 13131.307, %v242_v38  ;;  %v247_v47 = vadd.f32 13131.307, %v243_v39  ;;  %vm1450_vm7 = vcmp.eq.f32.partialorder %v318_v20, 8.507059e+37  ;;  %v327_v50 = vmul.f32 %v1374_v51, %v326_v33 }
  0x42   :  { %v248_v48 = vadd.f32 13131.307, %v244_v42  ;;  %vm330_vm9 = vweird.f32 %v1374_v51  ;;  %v249_v52 = vadd.f32 13131.307, %v245_v44  ;;  %v342_v56 = vmul.f32 %v1382_v54, %v341_v43 }
  0x43   :  { %v250_v53 = vmul.f32 %v246_v46, %v1328_v16  ;;  %v251_v55 = vmul.f32 %v247_v47, %v1332_v17  ;;  %v333_v20 = vand.u32 2147483647, %v1335_v18  ;;  %v335_v58 = vand.u32 2147483648, %v1335_v18  ;;  %vm1475_vm12 = vmor %vm329_vm8, %vm330_vm9 }
  0x44   :  { %v252_v57 = vmul.f32 %v248_v48, %v1337_v19  ;;  %v253_v59 = vmul.f32 %v249_v52, %v1342_v25  ;;  %vm345_vm11 = vweird.f32 %v1382_v54  ;;  %v328_v1 = vadd.f32 %v1374_v51, %v327_v50 }
  0x45   :  { %v254_v60 = vadd.f32 -6766.711, %v250_v53  ;;  %v255_v61 = vadd.f32 -6766.711, %v251_v55  ;;  %v348_v27 = vand.u32 2147483647, %v1340_v21  ;;  %v343_v37 = vadd.f32 %v1382_v54, %v342_v56  ;;  %vm1490_vm14 = vmor %vm344_vm10, %vm345_vm11 }
  0x46   :  { %v256_v63 = vadd.f32 -6766.711, %v252_v57  ;;  %v350_v28 = vand.u32 2147483648, %v1340_v21  ;;  %v257_v29 = vadd.f32 -6766.711, %v253_v59  ;;  %v207_v38 = vsub.f32 1.0, %v1427_v24 }
  0x47   :  { %v258_v32 = vmul.f32 %v254_v60, %v1328_v16  ;;  %v259_v33 = vmul.f32 %v255_v61, %v1332_v17  ;;  %v321_v42 = vor.u32 1.1754944e-38, %v320_v26  ;;  %vm1484_vm13 = vcmp.eq.f32.partialorder %v333_v20, 8.507059e+37 }
  0x48   :  { %v260_v39 = vmul.f32 %v256_v63, %v1337_v19  ;;  %v261_v44 = vmul.f32 %v257_v29, %v1342_v25  ;;  %v336_v24 = vor.u32 1.1754944e-38, %v335_v58  ;;  %v332_v23 = vsel %vm1475_vm12, %v1374_v51, %v328_v1 }
  0x49   :  { %v262_v46 = vadd.f32 1955.469, %v258_v32  ;;  %v263_v47 = vadd.f32 1955.469, %v259_v33  ;;  %vm1498_vm15 = vcmp.eq.f32.partialorder %v348_v27, 8.507059e+37  ;;  %v351_v50 = vor.u32 1.1754944e-38, %v350_v28 }
  0x4a   :  { %v264_v48 = vadd.f32 1955.469, %v260_v39  ;;  %v265_v21 = vadd.f32 1955.469, %v261_v44  ;;  %v347_v55 = vsel %vm1490_vm14, %v1382_v54, %v343_v37  ;;  %v208_v56 = vsub.f32 1.0, %v1438_v36 }
  0x4b   :  { %v266_v52 = vmul.f32 %v262_v46, %v1328_v16  ;;  %v267_v53 = vmul.f32 %v263_v47, %v1332_v17  ;;  %v214_v57 = vmul.f32 7.0, %v1328_v16  ;;  %v215_v51 = vmul.f32 7.0, %v1332_v17 }
  0x4c   :  { %v268_v20 = vmul.f32 %v264_v48, %v1337_v19  ;;  %v216_v58 = vmul.f32 7.0, %v1337_v19  ;;  %v269_v59 = vmul.f32 %v265_v21, %v1342_v25  ;;  %v1520_v54 = vsel %vm1450_vm7, %v321_v42, %v317_v6 }
  0x4d   :  { %v1524_v36 = vsel %vm1484_vm13, %v336_v24, %v332_v23  ;;  %v209_v60 = vsub.f32 1.0, %v1445_v41  ;;  %v270_v61 = vadd.f32 -316.62415, %v266_v52  ;;  %v271_v63 = vadd.f32 -316.62415, %v267_v53 }
  0x4e   :  { %v1529_v1 = vsel %vm1498_vm15, %v351_v50, %v347_v55  ;;  %v210_v31 = vmul.f32 %v206_v35, %v1421_v62  ;;  %v272_v27 = vadd.f32 -316.62415, %v268_v20  ;;  %v273_v45 = vadd.f32 -316.62415, %v269_v59 }
  0x4f   :  { %v358_v14 = vmul.f32 2.0, %v1390_v4  ;;  %v211_v6 = vmul.f32 %v207_v38, %v1430_v2  ;;  %v217_v49 = vmul.f32 7.0, %v1342_v25  ;;  %v359_v28 = vmul.f32 2.0, %v1520_v54 }
  0x50   :  { %v360_v41 = vmul.f32 2.0, %v1524_v36  ;;  %v212_v29 = vmul.f32 %v208_v56, %v1433_v30  ;;  %v218_v32 = vsub.f32 1.0, %v214_v57  ;;  %v219_v33 = vsub.f32 1.0, %v215_v51 }
  0x51   :  { %v361_v34 = vmul.f32 2.0, %v1529_v1  ;;  %v220_v37 = vsub.f32 1.0, %v216_v58  ;;  %v274_v62 = vmul.f32 %v270_v61, %v1328_v16  ;;  %v275_v35 = vmul.f32 %v271_v63, %v1332_v17 }
  0x52   :  { %v354_v39 = vsub.f32 1.0, %v1390_v4  ;;  %v276_v2 = vmul.f32 %v272_v27, %v1337_v19  ;;  %v277_v38 = vmul.f32 %v273_v45, %v1342_v25  ;;  %v355_v42 = vsub.f32 1.0, %v1520_v54 }
  0x53   :  { %v362_v43 = vsub.f32 1.0, %v358_v14  ;;  %v356_v30 = vsub.f32 1.0, %v1524_v36  ;;  %v363_v18 = vsub.f32 1.0, %v359_v28  ;;  %v364_v44 = vsub.f32 1.0, %v360_v41 }
  0x54   :  { %v370_v46 = vmul.f32 3.0, %v1390_v4  ;;  %v357_v47 = vsub.f32 1.0, %v1529_v1  ;;  %v365_v24 = vsub.f32 1.0, %v361_v34  ;;  %v371_v48 = vmul.f32 3.0, %v1520_v54 }
  0x55   :  { %v372_v23 = vmul.f32 3.0, %v1524_v36  ;;  %v213_v26 = vmul.f32 %v209_v60, %v1442_v40  ;;  %v278_v50 = vadd.f32 24.458334, %v274_v62  ;;  %v279_v21 = vadd.f32 24.458334, %v275_v35 }
  0x56   :  { %v373_v52 = vmul.f32 3.0, %v1529_v1  ;;  %v221_v53 = vsub.f32 1.0, %v217_v49  ;;  %v280_v55 = vadd.f32 24.458334, %v276_v2  ;;  %v281_v56 = vadd.f32 24.458334, %v277_v38 }
  0x57   :  { %v366_v57 = vmul.f32 %v362_v43, %v354_v39  ;;  %v367_v51 = vmul.f32 %v363_v18, %v355_v42  ;;  %v368_v20 = vmul.f32 %v364_v44, %v356_v30  ;;  %v374_v58 = vsub.f32 1.0, %v370_v46 }
  0x58   :  { %v382_v59 = vmul.f32 4.0, %v1390_v4  ;;  %v369_v61 = vmul.f32 %v365_v24, %v357_v47  ;;  %v375_v63 = vsub.f32 1.0, %v371_v48  ;;  %v376_v27 = vsub.f32 1.0, %v372_v23 }
  0x59   :  { %v383_v45 = vmul.f32 4.0, %v1520_v54  ;;  %v282_v40 = vmul.f32 %v278_v50, %v1328_v16  ;;  %v283_v60 = vmul.f32 %v279_v21, %v1332_v17  ;;  %v377_v14 = vsub.f32 1.0, %v373_v52 }
  0x5a   :  { %v384_v49 = vmul.f32 4.0, %v1524_v36  ;;  %v1557_v28 = vmul.f32 %v218_v32, %v210_v31  ;;  %v1559_v41 = vmul.f32 %v219_v33, %v211_v6  ;;  %v284_v34 = vmul.f32 %v280_v55, %v1337_v19 }
  0x5b   :  { %v285_v62 = vmul.f32 %v281_v56, %v1342_v25  ;;  %v1563_v35 = vmul.f32 %v220_v37, %v212_v29  ;;  %v378_v39 = vmul.f32 %v374_v58, %v366_v57  ;;  %v385_v2 = vmul.f32 4.0, %v1529_v1 }
  0x5c   :  { %v386_v38 = vsub.f32 1.0, %v382_v59  ;;  %v1566_v16 = vmul.f32 %v221_v53, %v213_v26  ;;  %v379_v17 = vmul.f32 %v375_v63, %v367_v51  ;;  %v380_v42 = vmul.f32 %v376_v27, %v368_v20 }
  0x5d   :  { %v387_v43 = vsub.f32 1.0, %v383_v45  ;;  %v1569_v31 = vadd.f32 %v282_v40, %v1557_v28  ;;  %v1572_v6 = vadd.f32 %v283_v60, %v1559_v41  ;;  %v381_v19 = vmul.f32 %v377_v14, %v369_v61 }
  0x5e   :  { %v388_v32 = vsub.f32 1.0, %v384_v49  ;;  %v1575_v25 = vadd.f32 %v284_v34, %v1563_v35  ;;  %v1578_v29 = vadd.f32 %v285_v62, %v1566_v16  ;;  %v394_v33 = vmul.f32 5.0, %v1390_v4 }
  0x5f   :  { %v395_v37 = vmul.f32 5.0, %v1520_v54  ;;  %v389_v30 = vsub.f32 1.0, %v385_v2  ;;  %v390_v18 = vmul.f32 %v386_v38, %v378_v39  ;;  %v430_v44 = vmul.f32 -0.0007588389, %v1390_v4 }
  0x60   :  { %v431_v46 = vmul.f32 -0.0007588389, %v1520_v54  ;;  %v391_v47 = vmul.f32 %v387_v43, %v379_v17  ;;  %v396_v24 = vmul.f32 5.0, %v1524_v36  ;;  %v397_v48 = vmul.f32 5.0, %v1529_v1 }
  0x61   :  { %v432_v23 = vmul.f32 -0.0007588389, %v1524_v36  ;;  %v392_v26 = vmul.f32 %v388_v32, %v380_v42  ;;  %v433_v50 = vmul.f32 -0.0007588389, %v1529_v1  ;;  %v434_v21 = vadd.f32 5039.992, %v430_v44 }
  0x62   :  { %v435_v52 = vadd.f32 5039.992, %v431_v46  ;;  %v398_v53 = vsub.f32 1.0, %v394_v33  ;;  %v1590_v56 = vadd.f32 %v1252_v10, %v1238_v0  ;;  %v1594_v57 = vadd.f32 %v1255_v11, %v1270_v22 }
  0x63   :  { %v436_v55 = vadd.f32 5039.992, %v432_v23  ;;  %v437_v51 = vadd.f32 5039.992, %v433_v50  ;;  %v438_v20 = vmul.f32 %v434_v21, %v1390_v4  ;;  %v1600_v59 = vadd.f32 %v1258_v12, %v1320_v3 }
  0x64   :  { %v439_v58 = vmul.f32 %v435_v52, %v1520_v54  ;;  %v399_v61 = vsub.f32 1.0, %v395_v37  ;;  %v982_v27 = vadd.f32 -1.0, %v1590_v56  ;;  %v983_v0 = vadd.f32 -1.0, %v1594_v57 }
  0x65   :  { %v440_v63 = vmul.f32 %v436_v55, %v1524_v36  ;;  %v441_v45 = vmul.f32 %v437_v51, %v1529_v1  ;;  %v442_v22 = vadd.f32 -13067.883, %v438_v20  ;;  %v984_v60 = vadd.f32 -1.0, %v1600_v59 }
  0x66   :  { %v443_v40 = vadd.f32 -13067.883, %v439_v58  ;;  %v393_v14 = vmul.f32 %v389_v30, %v381_v19  ;;  %v1607_v34 = vadd.f32 8.0, %v982_v27  ;;  %v1609_v62 = vadd.f32 8.0, %v983_v0 }
  0x67   :  { %v444_v49 = vadd.f32 -13067.883, %v440_v63  ;;  %v400_v3 = vsub.f32 1.0, %v396_v24  ;;  %v445_v39 = vadd.f32 -13067.883, %v441_v45  ;;  %v446_v2 = vmul.f32 %v442_v22, %v1390_v4 }
  0x68   :  { %v447_v38 = vmul.f32 %v443_v40, %v1520_v54  ;;  %v406_v17 = vmul.f32 6.0, %v1390_v4  ;;  %v407_v42 = vmul.f32 6.0, %v1520_v54  ;;  %1016 = vrcp.f32 %v1607_v34 }
  0x69   :  { %v448_v43 = vmul.f32 %v444_v49, %v1524_v36  ;;  %v449_v19 = vmul.f32 %v445_v39, %v1529_v1  ;;  %v450_v32 = vadd.f32 13131.307, %v446_v2  ;;  %v1618_v37 = vadd.f32 8.0, %v984_v60 }
  0x6a   :  { %v451_v33 = vadd.f32 13131.307, %v447_v38  ;;  %v401_v30 = vsub.f32 1.0, %v397_v48  ;;  %v402_v44 = vmul.f32 %v398_v53, %v390_v18  ;;  %1018 = vrcp.f32 %v1609_v62 }
  0x6b   :  { %v452_v46 = vadd.f32 13131.307, %v448_v43  ;;  %v453_v24 = vadd.f32 13131.307, %v449_v19  ;;  %v454_v23 = vmul.f32 %v450_v32, %v1390_v4  ;;  %v1625_v21 = vadd.f32 %v1261_v13, %v1324_v15 }
  0x6c   :  { %v455_v50 = vmul.f32 %v451_v33, %v1520_v54  ;;  %v403_v52 = vmul.f32 %v399_v61, %v391_v47  ;;  %v1628_v55 = vmul.f32 6.0, %v1524_v36  ;;  %v1631_v51 = vmul.f32 6.0, %v1529_v1 }
  0x6d   :  { %v456_v18 = vmul.f32 %v452_v46, %v1524_v36  ;;  %v457_v48 = vmul.f32 %v453_v24, %v1529_v1  ;;  %v458_v53 = vadd.f32 -6766.711, %v454_v23  ;;  %1020 = vrcp.f32 %v1618_v37 }
  0x6e   :  { %v459_v20 = vadd.f32 -6766.711, %v455_v50  ;;  %v1636_v58 = vpop.eup %1016  ;;  %v404_v63 = vmul.f32 %v400_v3, %v392_v26  ;;  %v410_v15 = vsub.f32 1.0, %v406_v17  ;;  %v411_v27 = vsub.f32 1.0, %v407_v42 }
  0x6f   :  { %v460_v47 = vadd.f32 -6766.711, %v456_v18  ;;  %v1638_v61 = vmul.f32 %v401_v30, %v393_v14  ;;  %v462_v0 = vmul.f32 %v458_v53, %v1390_v4  ;;  %v985_v45 = vadd.f32 -1.0, %v1625_v21 }
  0x70   :  { %v507_v22 = vmul.f32 %v1636_v58, %v1607_v34  ;;  %v1644_v40 = vpop.eup %1018  ;;  %v412_v60 = vsub.f32 1.0, %v1628_v55  ;;  %v413_v49 = vsub.f32 1.0, %v1631_v51  ;;  %v1649_v26 = vmul.f32 7.0, %v1390_v4 }
  0x71   :  { %v1652_v3 = vmul.f32 7.0, %v1520_v54  ;;  %v461_v14 = vadd.f32 -6766.711, %v457_v48  ;;  %v463_v39 = vmul.f32 %v459_v20, %v1520_v54  ;;  %v464_v2 = vmul.f32 %v460_v47, %v1524_v36 }
  0x72   :  { %v508_v38 = vsub.f32 1.0, %v507_v22  ;;  %v1656_v17 = vmul.f32 %v410_v15, %v402_v44  ;;  %v1658_v42 = vmul.f32 %v411_v27, %v403_v52  ;;  %v466_v43 = vadd.f32 1955.469, %v462_v0 }
  0x73   :  { %v522_v19 = vmul.f32 %v1644_v40, %v1609_v62  ;;  %v1021_v32 = vpop.eup %1020  ;;  %v1662_v33 = vadd.f32 8.0, %v985_v45  ;;  %vm511_vm0 = vweird.f32 %v1607_v34  ;;  %v515_v46 = vand.u32 2147483647, %v1607_v34 }
  0x74   :  { %v509_v30 = vmul.f32 %v1636_v58, %v508_v38  ;;  %v517_v24 = vand.u32 2147483648, %v1607_v34  ;;  %vm526_vm1 = vweird.f32 %v1609_v62  ;;  %v537_v44 = vmul.f32 %v1021_v32, %v1618_v37 }
  0x75   :  { %v523_v23 = vsub.f32 1.0, %v522_v19  ;;  %v465_v50 = vmul.f32 %v461_v14, %v1529_v1  ;;  %v467_v52 = vadd.f32 1955.469, %v463_v39  ;;  %v468_v55 = vadd.f32 1955.469, %v464_v2 }
  0x76   :  { %vm512_vm2 = vweird.f32 %v1636_v58  ;;  %v470_v18 = vmul.f32 %v466_v43, %v1390_v4  ;;  %vm527_vm3 = vweird.f32 %v1644_v40  ;;  %v538_v53 = vsub.f32 1.0, %v537_v44 }
  0x77   :  { %v524_v48 = vmul.f32 %v1644_v40, %v523_v23  ;;  %v510_v20 = vadd.f32 %v1636_v58, %v509_v30  ;;  %v532_v15 = vand.u32 2147483648, %v1609_v62  ;;  %vm541_vm4 = vweird.f32 %v1618_v37  ;;  %vm1680_vm6 = vmor %vm511_vm0, %vm512_vm2 }
  0x78   :  { %vm542_vm5 = vweird.f32 %v1021_v32  ;;  %v530_v0 = vand.u32 2147483647, %v1609_v62  ;;  %v539_v45 = vmul.f32 %v1021_v32, %v538_v53  ;;  %v547_v22 = vand.u32 2147483648, %v1618_v37  ;;  %vm1689_vm7 = vmor %vm526_vm1, %vm527_vm3 }
  0x79   :  { %v525_v47 = vadd.f32 %v1644_v40, %v524_v48  ;;  %v469_v14 = vadd.f32 1955.469, %v465_v50  ;;  %v518_v39 = vor.u32 1.1754944e-38, %v517_v24  ;;  %v545_v34 = vand.u32 2147483647, %v1618_v37  ;;  %vm1700_vm8 = vmor %vm541_vm4, %vm542_vm5 }
  0x7a   :  { %1022 = vrcp.f32 %v1662_v33  ;;  %v471_v38 = vmul.f32 %v467_v52, %v1520_v54  ;;  %v472_v43 = vmul.f32 %v468_v55, %v1524_v36  ;;  %v474_v19 = vadd.f32 -316.62415, %v470_v18 }
  0x7b   :  { %v540_v30 = vadd.f32 %v1021_v32, %v539_v45  ;;  %v1705_v62 = vmul.f32 7.0, %v1524_v36  ;;  %v514_v23 = vsel %vm1680_vm6, %v1636_v58, %v510_v20  ;;  %vm516_vm9 = vcmp.eq.f32.partialorder %v515_v46, 8.507059e+37 }
  0x7c   :  { %v533_v44 = vor.u32 1.1754944e-38, %v532_v15  ;;  %v1710_v50 = vmul.f32 %v412_v60, %v404_v63  ;;  %v529_v52 = vsel %vm1689_vm7, %v1644_v40, %v525_v47  ;;  %vm531_vm10 = vcmp.eq.f32.partialorder %v530_v0, 8.507059e+37 }
  0x7d   :  { %v548_v37 = vor.u32 1.1754944e-38, %v547_v22  ;;  %v1716_v55 = vmul.f32 7.0, %v1529_v1  ;;  %v473_v18 = vmul.f32 %v469_v14, %v1529_v1  ;;  %v544_v48 = vsel %vm1700_vm8, %v1021_v32, %v540_v30 }
  0x7e   :  { %vm546_vm11 = vcmp.eq.f32.partialorder %v545_v34, 8.507059e+37  ;;  %v475_v58 = vadd.f32 -316.62415, %v471_v38  ;;  %v476_v46 = vadd.f32 -316.62415, %v472_v43  ;;  %v478_v63 = vmul.f32 %v474_v19, %v1390_v4 }
  0x7f   :  { %v1722_v60 = vsel %vm516_vm9, %v518_v39, %v514_v23  ;;  %v422_v40 = vsub.f32 1.0, %v1649_v26  ;;  %v423_v20 = vsub.f32 1.0, %v1652_v3  ;;  %v1728_v15 = vsel %vm531_vm10, %v533_v44, %v529_v52 }
  0x80   :  { %v1724_v53 = vpop.eup %1022  ;;  %v570_v27 = vmul.f32 2.0, %v1722_v60  ;;  %v417_v32 = vmul.f32 %v413_v49, %v1638_v61  ;;  %v1734_v47 = vsel %vm546_vm11, %v548_v37, %v544_v48  ;;  %v571_v45 = vmul.f32 2.0, %v1728_v15 }
  0x81   :  { %v552_v0 = vmul.f32 %v1724_v53, %v1662_v33  ;;  %v424_v22 = vsub.f32 1.0, %v1705_v62  ;;  %v425_v26 = vsub.f32 1.0, %v1716_v55  ;;  %v477_v3 = vadd.f32 -316.62415, %v473_v18 }
  0x82   :  { %v572_v14 = vmul.f32 2.0, %v1734_v47  ;;  %v479_v39 = vmul.f32 %v475_v58, %v1520_v54  ;;  %v480_v2 = vmul.f32 %v476_v46, %v1524_v36  ;;  %v482_v51 = vadd.f32 24.458334, %v478_v63 }
  0x83   :  { %v553_v61 = vsub.f32 1.0, %v552_v0  ;;  %vm556_vm12 = vweird.f32 %v1662_v33  ;;  %v566_v49 = vsub.f32 1.0, %v1722_v60  ;;  %v574_v34 = vsub.f32 1.0, %v570_v27 }
  0x84   :  { %v582_v38 = vmul.f32 3.0, %v1722_v60  ;;  %v567_v19 = vsub.f32 1.0, %v1728_v15  ;;  %v575_v30 = vsub.f32 1.0, %v571_v45  ;;  %v583_v24 = vmul.f32 3.0, %v1728_v15 }
  0x85   :  { %v554_v43 = vmul.f32 %v1724_v53, %v553_v61  ;;  %vm557_vm13 = vweird.f32 %v1724_v53  ;;  %v568_v62 = vsub.f32 1.0, %v1734_v47  ;;  %v576_v23 = vsub.f32 1.0, %v572_v14 }
  0x86   :  { %v584_v44 = vmul.f32 3.0, %v1734_v47  ;;  %v481_v52 = vmul.f32 %v477_v3, %v1529_v1  ;;  %v483_v37 = vadd.f32 24.458334, %v479_v39  ;;  %v484_v55 = vadd.f32 24.458334, %v480_v2  ;;  %vm1759_vm14 = vmor %vm556_vm12, %vm557_vm13 }
  0x87   :  { %v562_v18 = vand.u32 2147483648, %v1662_v33  ;;  %v555_v48 = vadd.f32 %v1724_v53, %v554_v43  ;;  %v560_v58 = vand.u32 2147483647, %v1662_v33  ;;  %v578_v46 = vmul.f32 %v574_v34, %v566_v49 }
  0x88   :  { %v586_v63 = vsub.f32 1.0, %v582_v38  ;;  %v579_v0 = vmul.f32 %v575_v30, %v567_v19  ;;  %v587_v45 = vsub.f32 1.0, %v583_v24  ;;  %v594_v3 = vmul.f32 4.0, %v1722_v60 }
  0x89   :  { %v595_v14 = vmul.f32 4.0, %v1728_v15  ;;  %v1766_v39 = vmul.f32 %v422_v40, %v1656_v17  ;;  %v580_v2 = vmul.f32 %v576_v23, %v568_v62  ;;  %v588_v61 = vsub.f32 1.0, %v584_v44 }
  0x8a   :  { %v596_v49 = vmul.f32 4.0, %v1734_v47  ;;  %v485_v34 = vadd.f32 24.458334, %v481_v52  ;;  %v486_v33 = vmul.f32 %v482_v51, %v1390_v4  ;;  %v487_v38 = vmul.f32 %v483_v37, %v1520_v54 }
  0x8b   :  { %v563_v43 = vor.u32 1.1754944e-38, %v562_v18  ;;  %v488_v19 = vmul.f32 %v484_v55, %v1524_v36  ;;  %v559_v30 = vsel %vm1759_vm14, %v1724_v53, %v555_v48  ;;  %vm561_vm15 = vcmp.eq.f32.partialorder %v560_v58, 8.507059e+37 }
  0x8c   :  { %v590_v24 = vmul.f32 %v586_v63, %v578_v46  ;;  %v591_v17 = vmul.f32 %v587_v45, %v579_v0  ;;  %v598_v40 = vsub.f32 1.0, %v594_v3  ;;  %v599_v62 = vsub.f32 1.0, %v595_v14 }
  0x8d   :  { %v606_v23 = vmul.f32 5.0, %v1722_v60  ;;  %v1777_v44 = vmul.f32 %v423_v20, %v1658_v42  ;;  %v592_v4 = vmul.f32 %v588_v61, %v580_v2  ;;  %v600_v51 = vsub.f32 1.0, %v596_v49 }
  0x8e   :  { %v607_v54 = vmul.f32 5.0, %v1728_v15  ;;  %v1781_v36 = vmul.f32 %v424_v22, %v1710_v50  ;;  %v1783_v52 = vmul.f32 %v425_v26, %v417_v32  ;;  %v1785_v53 = vsel %vm561_vm15, %v563_v43, %v559_v30 }
  0x8f   :  { %v608_v37 = vmul.f32 5.0, %v1734_v47  ;;  %v1789_v55 = vmul.f32 %v485_v34, %v1529_v1  ;;  %v1792_v18 = vadd.f32 %v486_v33, %v1766_v39  ;;  %v1795_v42 = vadd.f32 %v487_v38, %v1777_v44 }
  0x90   :  { %v573_v20 = vmul.f32 2.0, %v1785_v53  ;;  %v1799_v50 = vadd.f32 %v488_v19, %v1781_v36  ;;  %v602_v32 = vmul.f32 %v598_v40, %v590_v24  ;;  %v603_v22 = vmul.f32 %v599_v62, %v591_v17 }
  0x91   :  { %v610_v26 = vsub.f32 1.0, %v606_v23  ;;  %v604_v48 = vmul.f32 %v600_v51, %v592_v4  ;;  %v611_v58 = vsub.f32 1.0, %v607_v54  ;;  %v618_v46 = vmul.f32 6.0, %v1722_v60 }
  0x92   :  { %v642_v1 = vmul.f32 -0.0007588389, %v1722_v60  ;;  %v569_v63 = vsub.f32 1.0, %v1785_v53  ;;  %v585_v27 = vmul.f32 3.0, %v1785_v53  ;;  %v612_v0 = vsub.f32 1.0, %v608_v37 }
  0x93   :  { %v643_v45 = vmul.f32 -0.0007588389, %v1728_v15  ;;  %v577_v3 = vsub.f32 1.0, %v573_v20  ;;  %v597_v14 = vmul.f32 4.0, %v1785_v53  ;;  %v644_v2 = vmul.f32 -0.0007588389, %v1734_v47 }
  0x94   :  { %v645_v61 = vmul.f32 -0.0007588389, %v1785_v53  ;;  %v609_v49 = vmul.f32 5.0, %v1785_v53  ;;  %v614_v34 = vmul.f32 %v610_v26, %v602_v32  ;;  %v646_v33 = vadd.f32 5039.992, %v642_v1 }
  0x95   :  { %v647_v38 = vadd.f32 5039.992, %v643_v45  ;;  %v615_v43 = vmul.f32 %v611_v58, %v603_v22  ;;  %v619_v19 = vmul.f32 6.0, %v1728_v15  ;;  %v648_v30 = vadd.f32 5039.992, %v644_v2 }
  0x96   :  { %v649_v24 = vadd.f32 5039.992, %v645_v61  ;;  %v589_v17 = vsub.f32 1.0, %v585_v27  ;;  %v616_v40 = vmul.f32 %v612_v0, %v604_v48  ;;  %v650_v62 = vmul.f32 %v646_v33, %v1722_v60 }
  0x97   :  { %v651_v23 = vmul.f32 %v647_v38, %v1728_v15  ;;  %v581_v4 = vmul.f32 %v577_v3, %v569_v63  ;;  %v601_v51 = vsub.f32 1.0, %v597_v14  ;;  %v652_v54 = vmul.f32 %v648_v30, %v1734_v47 }
  0x98   :  { %v653_v37 = vmul.f32 %v649_v24, %v1785_v53  ;;  %v613_v20 = vsub.f32 1.0, %v609_v49  ;;  %v620_v32 = vmul.f32 6.0, %v1734_v47  ;;  %v654_v22 = vadd.f32 -13067.883, %v650_v62 }
  0x99   :  { %v655_v26 = vadd.f32 -13067.883, %v651_v23  ;;  %v622_v58 = vsub.f32 1.0, %v618_v46  ;;  %v623_v1 = vsub.f32 1.0, %v619_v19  ;;  %v656_v45 = vadd.f32 -13067.883, %v652_v54 }
  0x9a   :  { %v657_v27 = vadd.f32 -13067.883, %v653_v37  ;;  %v621_v48 = vmul.f32 6.0, %v1785_v53  ;;  %v630_v0 = vmul.f32 7.0, %v1722_v60  ;;  %v658_v63 = vmul.f32 %v654_v22, %v1722_v60 }
  0x9b   :  { %v659_v3 = vmul.f32 %v655_v26, %v1728_v15  ;;  %v593_v14 = vmul.f32 %v589_v17, %v581_v4  ;;  %v631_v2 = vmul.f32 7.0, %v1728_v15  ;;  %v660_v61 = vmul.f32 %v656_v45, %v1734_v47 }
  0x9c   :  { %v661_v49 = vmul.f32 %v657_v27, %v1785_v53  ;;  %v624_v33 = vsub.f32 1.0, %v620_v32  ;;  %v632_v46 = vmul.f32 7.0, %v1734_v47  ;;  %v662_v38 = vadd.f32 13131.307, %v658_v63 }
  0x9d   :  { %v663_v19 = vadd.f32 13131.307, %v659_v3  ;;  %v626_v30 = vmul.f32 %v622_v58, %v614_v34  ;;  %v627_v24 = vmul.f32 %v623_v1, %v615_v43  ;;  %v664_v62 = vadd.f32 13131.307, %v660_v61 }
  0x9e   :  { %v665_v23 = vadd.f32 13131.307, %v661_v49  ;;  %v633_v54 = vmul.f32 7.0, %v1785_v53  ;;  %v634_v37 = vsub.f32 1.0, %v630_v0  ;;  %v666_v17 = vmul.f32 %v662_v38, %v1722_v60 }
  0x9f   :  { %v667_v4 = vmul.f32 %v663_v19, %v1728_v15  ;;  %v605_v22 = vmul.f32 %v601_v51, %v593_v14  ;;  %v635_v26 = vsub.f32 1.0, %v631_v2  ;;  %v668_v45 = vmul.f32 %v664_v62, %v1734_v47 }
  0xa0   :  { %v669_v32 = vmul.f32 %v665_v23, %v1785_v53  ;;  %v628_v27 = vmul.f32 %v624_v33, %v616_v40  ;;  %v636_v63 = vsub.f32 1.0, %v632_v46  ;;  %v670_v3 = vadd.f32 -6766.711, %v666_v17 }
  0xa1   :  { %v671_v34 = vadd.f32 -6766.711, %v667_v4  ;;  %v493_v43 = vadd.f32 %v1789_v55, %v1783_v52  ;;  %v625_v58 = vsub.f32 1.0, %v621_v48  ;;  %v672_v1 = vadd.f32 -6766.711, %v668_v45 }
  0xa2   :  { %v673_v0 = vadd.f32 -6766.711, %v669_v32  ;;  %v637_v61 = vsub.f32 1.0, %v633_v54  ;;  %v638_v49 = vmul.f32 %v634_v37, %v626_v30  ;;  %v674_v38 = vmul.f32 %v670_v3, %v1722_v60 }
  0xa3   :  { %v675_v51 = vmul.f32 %v671_v34, %v1728_v15  ;;  %v617_v14 = vmul.f32 %v613_v20, %v605_v22  ;;  %v639_v2 = vmul.f32 %v635_v26, %v627_v24  ;;  %v676_v19 = vmul.f32 %v672_v1, %v1734_v47 }
  0xa4   :  { %v677_v40 = vmul.f32 %v673_v0, %v1785_v53  ;;  %v640_v33 = vmul.f32 %v636_v63, %v628_v27  ;;  %v678_v46 = vadd.f32 1955.469, %v674_v38  ;;  %v706_v55 = vmul.f32 %v1792_v18, %v1569_v31  ;;  %v1860_v38 = vld [vmem:[#allocation2] sm:$0xff] }
  0xa5   :  { %v679_v62 = vadd.f32 1955.469, %v675_v51  ;;  %v680_v48 = vadd.f32 1955.469, %v676_v19  ;;  %v707_v30 = vmul.f32 %v1795_v42, %v1572_v6  ;;  %v794_v54 = vadd.f32 6.5, %v1252_v10 }
  0xa6   :  { %v681_v23 = vadd.f32 1955.469, %v677_v40  ;;  %v682_v20 = vmul.f32 %v678_v46, %v1722_v60  ;;  %v708_v37 = vmul.f32 %v1799_v50, %v1575_v25  ;;  %v795_v17 = vadd.f32 6.5, %v1255_v11 }
  0xa7   :  { %v683_v24 = vmul.f32 %v679_v62, %v1728_v15  ;;  %v629_v4 = vmul.f32 %v625_v58, %v617_v14  ;;  %v684_v22 = vmul.f32 %v680_v48, %v1734_v47  ;;  %v796_v18 = vadd.f32 6.5, %v1258_v12  ;;  %v1870_v48 = vld [vmem:[#allocation2 + $0x10] sm:$0xff] }
  0xa8   :  { %v685_v31 = vmul.f32 %v681_v23, %v1785_v53  ;;  %v686_v26 = vadd.f32 -316.62415, %v682_v20  ;;  %v709_v42 = vmul.f32 %v493_v43, %v1578_v29  ;;  %v1849_v45 = vmul.f32 %v706_v55, %v638_v49 }
  0xa9   :  { %v687_v6 = vadd.f32 -316.62415, %v683_v24  ;;  %v688_v32 = vadd.f32 -316.62415, %v684_v22  ;;  %v1851_v63 = vmul.f32 %v707_v30, %v639_v2  ;;  %1024 = vlog2.f32 %v794_v54 }
  0xaa   :  { %v689_v27 = vadd.f32 -316.62415, %v685_v31  ;;  %v690_v25 = vmul.f32 %v686_v26, %v1722_v60  ;;  %v797_v3 = vadd.f32 6.5, %v1261_v13  ;;  %1026 = vlog2.f32 %v795_v17 }
  0xab   :  { %v691_v50 = vmul.f32 %v687_v6, %v1728_v15  ;;  %v641_v34 = vmul.f32 %v637_v61, %v629_v4  ;;  %v692_v58 = vmul.f32 %v688_v32, %v1734_v47  ;;  %1028 = vlog2.f32 %v796_v18  ;;  %v1865_v61 = vld [vmem:[#allocation2 + $0x8] sm:$0xff]  ;;  %v1896_v18 = vld [vmem:[#allocation2 + $0x18] sm:$0xff] }
  0xac   :  { %v693_v1 = vmul.f32 %v689_v27, %v1785_v53  ;;  %v694_v29 = vadd.f32 24.458334, %v690_v25  ;;  %v714_v0 = vmul.f32 %v1766_v39, %v1557_v28  ;;  %v814_v51 = vadd.f32 7.5, %v1860_v38  ;;  %2126 = vst [vmem:[#allocation13_spill] sm:$0xff] %v1896_v18 }
  0xad   :  { %v695_v43 = vadd.f32 24.458334, %v691_v50  ;;  %v696_v14 = vadd.f32 24.458334, %v692_v58  ;;  %v715_v40 = vmul.f32 %v1777_v44, %v1559_v41  ;;  %v815_v46 = vadd.f32 7.5, %v1865_v61 }
  0xae   :  { %v697_v19 = vadd.f32 24.458334, %v693_v1  ;;  %v698_v62 = vmul.f32 %v694_v29, %v1722_v60  ;;  %1030 = vlog2.f32 %v797_v3  ;;  %v816_v28 = vadd.f32 7.5, %v1870_v48 }
  0xaf   :  { %v699_v55 = vmul.f32 %v695_v43, %v1728_v15  ;;  %v1025_v39 = vpop.eup %1024  ;;  %v700_v23 = vmul.f32 %v696_v14, %v1734_v47  ;;  %v1875_v54 = vmul.f32 %v708_v37, %v640_v33  ;;  %v716_v41 = vmul.f32 %v1781_v36, %v1563_v35 }
  0xb0   :  { %v701_v30 = vmul.f32 %v697_v19, %v1785_v53  ;;  %v1027_v44 = vpop.eup %1026  ;;  %v702_v20 = vadd.f32 %v698_v62, %v638_v49  ;;  %v717_v15 = vmul.f32 %v1783_v52, %v1566_v16  ;;  %1032 = vlog2.f32 %v814_v51 }
  0xb1   :  { %v703_v60 = vadd.f32 %v699_v55, %v639_v2  ;;  %v1029_v24 = vpop.eup %1028  ;;  %v704_v17 = vadd.f32 %v700_v23, %v640_v33  ;;  %v1881_v22 = vmul.f32 %v709_v42, %v641_v34  ;;  %1034 = vlog2.f32 %v815_v46 }
  0xb2   :  { %v705_v4 = vadd.f32 %v701_v30, %v641_v34  ;;  %v1883_v47 = vmul.f32 %v714_v0, %v702_v20  ;;  %v986_v37 = vadd.f32 -0.5, %v1252_v10  ;;  %1036 = vlog2.f32 %v816_v28 }
  0xb3   :  { %v1885_v53 = vmul.f32 %v715_v40, %v703_v60  ;;  %v1888_v35 = vmul.f32 %v716_v41, %v704_v17  ;;  %v987_v36 = vadd.f32 -0.5, %v1255_v11  ;;  %v988_v16 = vadd.f32 -0.5, %v1258_v12 }
  0xb4   :  { %v799_v52 = vmul.f32 0.6931472, %v1025_v39  ;;  %v1031_v49 = vpop.eup %1030  ;;  %v1892_v2 = vmul.f32 %v717_v15, %v705_v4  ;;  %1038 = vrcp.f32 %v1883_v47  ;;  %v801_v33 = vmul.f32 0.6931472, %v1027_v44 }
  0xb5   :  { %v803_v31 = vmul.f32 0.6931472, %v1029_v24  ;;  %1040 = vrcp.f32 %v1885_v53  ;;  %v1899_v26 = vadd.f32 7.5, %v1896_v18  ;;  %v1902_v6 = vadd.f32 6.5, %v1590_v56 }
  0xb6   :  { %v1905_v42 = vadd.f32 6.5, %v1594_v57  ;;  %v1033_v32 = vpop.eup %1032  ;;  %v731_v27 = vand.u32 2147483647, %v1883_v47  ;;  %1042 = vrcp.f32 %v1888_v35  ;;  %v1910_v25 = vadd.f32 -0.5, %v1261_v13 }
  0xb7   :  { %v1913_v50 = vadd.f32 6.5, %v1600_v59  ;;  %v1035_v3 = vpop.eup %1034  ;;  %v733_v34 = vand.u32 2147483648, %v1883_v47  ;;  %v746_v58 = vand.u32 2147483647, %v1885_v53  ;;  %v1917_v1 = vmul.f32 0.6931472, %v1031_v49 }
  0xb8   :  { %v1919_v29 = vmul.f32 %v986_v37, %v799_v52  ;;  %v1037_v43 = vpop.eup %1036  ;;  %v748_v0 = vand.u32 2147483648, %v1885_v53  ;;  %1044 = vrcp.f32 %v1892_v2  ;;  %v1923_v51 = vmul.f32 %v987_v36, %v801_v33 }
  0xb9   :  { %v1925_v14 = vmul.f32 %v988_v16, %v803_v31  ;;  %v1928_v19 = vadd.f32 0.5, %v1860_v38  ;;  %v1931_v40 = vadd.f32 0.5, %v1865_v61  ;;  %v1934_v46 = vadd.f32 0.5, %v1870_v48 }
  0xba   :  { %v1937_v62 = vadd.f32 0.5, %v1896_v18  ;;  %v1039_v55 = vpop.eup %1038  ;;  %vm727_vm0 = vweird.f32 %v1883_v47  ;;  %vm1940_vm1 = vcmp.eq.f32.partialorder %v731_v27, 8.507059e+37  ;;  %vm742_vm2 = vweird.f32 %v1885_v53 }
  0xbb   :  { %v761_v39 = vand.u32 2147483647, %v1888_v35  ;;  %v1041_v23 = vpop.eup %1040  ;;  %v723_v30 = vmul.f32 %v1039_v55, %v1883_v47  ;;  %v734_v41 = vor.u32 1.1754944e-38, %v733_v34  ;;  %vm1947_vm3 = vcmp.eq.f32.partialorder %v746_v58, 8.507059e+37 }
  0xbc   :  { %vm757_vm4 = vweird.f32 %v1888_v35  ;;  %v1043_v20 = vpop.eup %1042  ;;  %v738_v60 = vmul.f32 %v1041_v23, %v1885_v53  ;;  %v749_v15 = vor.u32 1.1754944e-38, %v748_v0  ;;  %v763_v24 = vand.u32 2147483648, %v1888_v35 }
  0xbd   :  { %vm772_vm5 = vweird.f32 %v1892_v2  ;;  %v724_v17 = vsub.f32 1.0, %v723_v30  ;;  %vm728_vm6 = vweird.f32 %v1039_v55  ;;  %v753_v4 = vmul.f32 %v1043_v20, %v1888_v35 }
  0xbe   :  { %v776_v37 = vand.u32 2147483647, %v1892_v2  ;;  %v1045_v36 = vpop.eup %1044  ;;  %v739_v16 = vsub.f32 1.0, %v738_v60  ;;  %vm743_vm7 = vweird.f32 %v1041_v23  ;;  %vm1957_vm8 = vcmp.eq.f32.partialorder %v761_v39, 8.507059e+37  ;;  %vm1965_vm10 = vmor %vm727_vm0, %vm728_vm6 }
  0xbf   :  { %v778_v49 = vand.u32 2147483648, %v1892_v2  ;;  %v725_v33 = vmul.f32 %v1039_v55, %v724_v17  ;;  %v754_v31 = vsub.f32 1.0, %v753_v4  ;;  %vm758_vm9 = vweird.f32 %v1043_v20  ;;  %vm1971_vm11 = vmor %vm742_vm2, %vm743_vm7 }
  0xc0   :  { %v768_v27 = vmul.f32 %v1045_v36, %v1892_v2  ;;  %v740_v58 = vmul.f32 %v1041_v23, %v739_v16  ;;  %v764_v0 = vor.u32 1.1754944e-38, %v763_v24  ;;  %v819_v30 = vmul.f32 0.6931472, %v1033_v32  ;;  %vm1977_vm13 = vmor %vm757_vm4, %vm758_vm9 }
  0xc1   :  { %v821_v39 = vmul.f32 0.6931472, %v1035_v3  ;;  %v726_v60 = vadd.f32 %v1039_v55, %v725_v33  ;;  %v755_v17 = vmul.f32 %v1043_v20, %v754_v31  ;;  %vm773_vm12 = vweird.f32 %v1045_v36 }
  0xc2   :  { %v769_v4 = vsub.f32 1.0, %v768_v27  ;;  %v741_v18 = vadd.f32 %v1041_v23, %v740_v58  ;;  %vm1981_vm14 = vcmp.eq.f32.partialorder %v776_v37, 8.507059e+37  ;;  %v779_v3 = vor.u32 1.1754944e-38, %v778_v49  ;;  %vm1995_vm15 = vmor %vm772_vm5, %vm773_vm12  ;;  %v2002_v49 = vld [vmem:[#allocation5 + $0x8] sm:$0xff] }
  0xc3   :  { %1046 = vlog2.f32 %v1899_v26  ;;  %v730_v53 = vsel %vm1965_vm10, %v1039_v55, %v726_v60  ;;  %v756_v24 = vadd.f32 %v1043_v20, %v755_v17  ;;  %v823_v26 = vmul.f32 0.6931472, %v1037_v43  ;;  %v2000_v55 = vld [vmem:[#allocation5] sm:$0xff] }
  0xc4   :  { %v770_v16 = vmul.f32 %v1045_v36, %v769_v4  ;;  %1048 = vlog2.f32 %v1902_v6  ;;  %v735_v35 = vsel %vm1940_vm1, %v734_v41, %v730_v53  ;;  %v745_v33 = vsel %vm1971_vm11, %v1041_v23, %v741_v18  ;;  %v2009_v18 = vld [vmem:[#allocation5 + $0x10] sm:$0xff]  ;;  %v2016_v41 = vld [vmem:[#allocation5 + $0x18] sm:$0xff] }
  0xc5   :  { %1050 = vlog2.f32 %v1905_v42  ;;  %v736_v6 = vmul.f32 %v735_v35, %v1849_v45  ;;  %v750_v28 = vsel %vm1947_vm3, %v749_v15, %v745_v33  ;;  %v760_v13 = vsel %vm1977_vm13, %v1043_v20, %v756_v24 }
  0xc6   :  { %v771_v2 = vadd.f32 %v1045_v36, %v770_v16  ;;  %v751_v23 = vmul.f32 %v750_v28, %v1851_v63  ;;  %v765_v42 = vsel %vm1957_vm8, %v764_v0, %v760_v13  ;;  %v841_v43 = vadd.f32 6.5, %v1625_v21 }
  0xc7   :  { %1052 = vlog2.f32 %v1913_v50  ;;  %v766_v45 = vmul.f32 %v765_v42, %v1875_v54  ;;  %v826_v20 = vmul.f32 %v819_v30, %v1928_v19  ;;  %v870_v52 = vadd.f32 %v1240_v5, %v2000_v55 }
  0xc8   :  { %v775_v44 = vsel %vm1995_vm15, %v1045_v36, %v771_v2  ;;  %1054 = vlog2.f32 %v736_v6  ;;  %v871_v50 = vadd.f32 %v1245_v7, %v2002_v49  ;;  %v827_v36 = vmul.f32 %v821_v39, %v1931_v40  ;;  %v2143_v2 = vld [vmem:[#allocation13_spill] sm:$0xff] }
  0xc9   :  { %v1047_v15 = vpop.eup %1046  ;;  %v780_v63 = vsel %vm1981_vm14, %v779_v3, %v775_v44  ;;  %1056 = vlog2.f32 %v751_v23  ;;  %v872_v19 = vadd.f32 %v1247_v8, %v2009_v18  ;;  %v873_v34 = vadd.f32 %v1249_v9, %v2016_v41  ;;  %v2144_v44 = vld [vmem:[#allocation12_spill] sm:$0xff] }
  0xca   :  { %v1049_v31 = vpop.eup %1048  ;;  %v781_v54 = vmul.f32 %v780_v63, %v1881_v22  ;;  %1058 = vlog2.f32 %v766_v45  ;;  %v874_v58 = vadd.f32 1e-10, %v870_v52  ;;  %v875_v0 = vadd.f32 1e-10, %v871_v50 }
  0xcb   :  { %v1051_v27 = vpop.eup %1050  ;;  %1060 = vlog2.f32 %v841_v43  ;;  %v825_v30 = vmul.f32 0.6931472, %v1047_v15  ;;  %v828_v60 = vmul.f32 %v823_v26, %v1934_v46  ;;  %v876_v17 = vadd.f32 1e-10, %v872_v19 }
  0xcc   :  { %1062 = vlog2.f32 %v781_v54  ;;  %v877_v22 = vadd.f32 1e-10, %v873_v34  ;;  %v809_v40 = vmul.f32 %v1910_v25, %v1917_v1  ;;  %v990_v39 = vadd.f32 -0.5, %v1590_v56 }
  0xcd   :  { %v1053_v4 = vpop.eup %1052  ;;  %1064 = vlog2.f32 %v874_v58  ;;  %v843_v32 = vmul.f32 0.6931472, %v1049_v31  ;;  %v2039_v53 = vadd.f32 %v826_v20, %v1919_v29  ;;  %v991_v24 = vadd.f32 -0.5, %v1594_v57 }
  0xce   :  { %v1055_v47 = vpop.eup %1054  ;;  %1066 = vlog2.f32 %v875_v0  ;;  %v845_v16 = vmul.f32 0.6931472, %v1051_v27  ;;  %v829_v35 = vmul.f32 %v825_v30, %v1937_v62  ;;  %v2044_v33 = vadd.f32 %v827_v36, %v1923_v51 }
  0xcf   :  { %v1057_v3 = vpop.eup %1056  ;;  %1068 = vlog2.f32 %v876_v17  ;;  %v2047_v25 = vadd.f32 %v828_v60, %v1925_v14  ;;  %v992_v1 = vadd.f32 -0.5, %v1600_v59  ;;  %v993_v29 = vadd.f32 -0.5, %v1625_v21 }
  0xd0   :  { %v1059_v46 = vpop.eup %1058  ;;  %1070 = vlog2.f32 %v877_v22  ;;  %v847_v37 = vmul.f32 0.6931472, %v1053_v4  ;;  %v850_v26 = vmul.f32 %v990_v39, %v843_v32  ;;  %v866_v62 = vadd.f32 %v1860_v38, %v1240_v5 }
  0xd1   :  { %v1061_v56 = vpop.eup %1060  ;;  %1072 = vlog2.f32 %v1252_v10  ;;  %v867_v51 = vadd.f32 %v1865_v61, %v1245_v7  ;;  %v851_v28 = vmul.f32 %v991_v24, %v845_v16  ;;  %v906_v59 = vadd.f32 1e-10, %v2000_v55 }
  0xd2   :  { %v1063_v57 = vpop.eup %1062  ;;  %1074 = vlog2.f32 %v1255_v11  ;;  %v849_v6 = vmul.f32 0.6931472, %v1061_v56  ;;  %v833_v13 = vadd.f32 %v829_v35, %v809_v40  ;;  %v868_v10 = vadd.f32 %v1870_v48, %v1247_v8 }
  0xd3   :  { %v1065_v14 = vpop.eup %1064  ;;  %1076 = vlog2.f32 %v1258_v12  ;;  %v869_v23 = vadd.f32 %v2143_v2, %v1249_v9  ;;  %v907_v42 = vadd.f32 1e-10, %v2002_v49  ;;  %v783_v45 = vmul.f32 0.6931472, %v1055_v47 }
  0xd4   :  { %v1067_v21 = vpop.eup %1066  ;;  %v852_v11 = vmul.f32 %v992_v1, %v847_v37  ;;  %1078 = vlog2.f32 %v2144_v44  ;;  %v908_v20 = vadd.f32 1e-10, %v2009_v18  ;;  %v785_v15 = vmul.f32 0.6931472, %v1057_v3 }
  0xd5   :  { %v1069_v43 = vpop.eup %1068  ;;  %v854_v55 = vsub.f32 %v2039_v53, %v850_v26  ;;  %v879_v63 = vmul.f32 0.6931472, %v1065_v14  ;;  %v909_v52 = vadd.f32 1e-10, %v2016_v41  ;;  %v853_v31 = vmul.f32 %v993_v29, %v849_v6 }
  0xd6   :  { %v1071_v12 = vpop.eup %1070  ;;  %v855_v54 = vsub.f32 %v2044_v33, %v851_v28  ;;  %v881_v36 = vmul.f32 0.6931472, %v1067_v21  ;;  %1080 = vlog2.f32 %v906_v59  ;;  %v787_v19 = vmul.f32 0.6931472, %v1059_v46 }
  0xd7   :  { %v1073_v50 = vpop.eup %1072  ;;  %v883_v27 = vmul.f32 0.6931472, %v1069_v43  ;;  %1082 = vlog2.f32 %v907_v42  ;;  %v856_v18 = vsub.f32 %v2047_v25, %v852_v11  ;;  %v885_v0 = vmul.f32 0.6931472, %v1071_v12 }
  0xd8   :  { %v1075_v49 = vpop.eup %1074  ;;  %v891_v34 = vmul.f32 0.6931472, %v1073_v50  ;;  %1084 = vlog2.f32 %v908_v20  ;;  %v886_v60 = vmul.f32 %v879_v63, %v866_v62  ;;  %v789_v22 = vmul.f32 0.6931472, %v1063_v57 }
  0xd9   :  { %v1077_v58 = vpop.eup %1076  ;;  %v893_v30 = vmul.f32 0.6931472, %v1075_v49  ;;  %1086 = vlog2.f32 %v909_v52  ;;  %v857_v47 = vsub.f32 %v833_v13, %v853_v31  ;;  %v887_v40 = vmul.f32 %v881_v36, %v867_v51 }
  0xda   :  { %v895_v17 = vmul.f32 0.6931472, %v1077_v58  ;;  %v898_v41 = vmul.f32 %v891_v34, %v1240_v5  ;;  %v1079_v4 = vpop.eup %1078  ;;  %v858_v32 = vadd.f32 %v854_v55, %v783_v45  ;;  %v888_v3 = vmul.f32 %v883_v27, %v868_v10 }
  0xdb   :  { %v899_v39 = vmul.f32 %v893_v30, %v1245_v7  ;;  %v897_v53 = vmul.f32 0.6931472, %v1079_v4  ;;  %v859_v46 = vadd.f32 %v855_v54, %v785_v15  ;;  %v889_v35 = vmul.f32 %v885_v0, %v869_v23 }
  0xdc   :  { %v900_v24 = vmul.f32 %v895_v17, %v1247_v8  ;;  %v1081_v16 = vpop.eup %1080  ;;  %v860_v25 = vadd.f32 %v856_v18, %v787_v19  ;;  %v902_v5 = vsub.f32 %v886_v60, %v898_v41  ;;  %v861_v37 = vadd.f32 %v857_v47, %v789_v22 }
  0xdd   :  { %v1083_v33 = vpop.eup %1082  ;;  %v901_v56 = vmul.f32 %v897_v53, %v1249_v9  ;;  %v911_v1 = vmul.f32 0.6931472, %v1081_v16  ;;  %v903_v57 = vsub.f32 %v887_v40, %v899_v39  ;;  %v862_v7 = vadd.f32 -6.5810614, %v858_v32 }
  0xde   :  { %v1085_v29 = vpop.eup %1084  ;;  %v913_v26 = vmul.f32 0.6931472, %v1083_v33  ;;  %v904_v51 = vsub.f32 %v888_v3, %v900_v24  ;;  %v863_v8 = vadd.f32 -6.5810614, %v859_v46  ;;  %v864_v13 = vadd.f32 -6.5810614, %v860_v25 }
  0xdf   :  { %v1087_v62 = vpop.eup %1086  ;;  %v915_v14 = vmul.f32 0.6931472, %v1085_v29  ;;  %v918_v6 = vmul.f32 %v1860_v38, %v911_v1  ;;  %v905_v28 = vsub.f32 %v889_v35, %v901_v56  ;;  %v865_v23 = vadd.f32 -6.5810614, %v861_v37 }
  0xe0   :  { %v917_v59 = vmul.f32 0.6931472, %v1087_v62  ;;  %v919_v21 = vmul.f32 %v1865_v61, %v913_v26 }
  0xe1   :  { %v920_v9 = vmul.f32 %v1870_v48, %v915_v14  ;;  %v922_v10 = vsub.f32 %v902_v5, %v918_v6 }
  0xe2   :  { %v921_v42 = vmul.f32 %v2143_v2, %v917_v59  ;;  %v923_v43 = vsub.f32 %v903_v57, %v919_v21 }
  0xe3   :  { %v924_v45 = vsub.f32 %v904_v51, %v920_v9  ;;  %v926_v11 = vadd.f32 %v922_v10, %v862_v7 }
  0xe4   :  { %v925_v44 = vsub.f32 %v905_v28, %v921_v42  ;;  %v927_v20 = vadd.f32 %v923_v43, %v863_v8 }
  0xe5   :  { %v928_v12 = vadd.f32 %v924_v45, %v864_v13  ;;  %vm930_vm0 = vcmp.ne.f32.partialorder %v926_v11, %v926_v11 }
  0xe6   :  { %v929_v38 = vadd.f32 %v925_v44, %v865_v23  ;;  %vm931_vm1 = vcmp.ne.f32.partialorder %v927_v20, %v927_v20  ;;  %v934_v15 = vsel %vm930_vm0, 0.0, %v926_v11 }
  0xe7   :  { %vm932_vm2 = vcmp.ne.f32.partialorder %v928_v12, %v928_v12  ;;  %v935_v55 = vsel %vm931_vm1, 0.0, %v927_v20  ;;  %vm938_vm3 = vcmp.eq.f32.partialorder %v934_v15, inf }
  0xe8   :  { %vm933_vm4 = vcmp.ne.f32.partialorder %v929_v38, %v929_v38  ;;  %v936_v61 = vsel %vm932_vm2, 0.0, %v928_v12  ;;  %vm939_vm5 = vcmp.eq.f32.partialorder %v935_v55, inf  ;;  %v942_v48 = vsel %vm938_vm3, 3.4028235e+38, %v934_v15 }
  0xe9   :  { %v937_v2 = vsel %vm933_vm4, 0.0, %v929_v38  ;;  %vm940_vm6 = vcmp.eq.f32.partialorder %v936_v61, inf  ;;  %v943_v63 = vsel %vm939_vm5, 3.4028235e+38, %v935_v55  ;;  %vm946_vm7 = vcmp.eq.f32.partialorder %v942_v48, -inf }
  0xea   :  { %vm941_vm8 = vcmp.eq.f32.partialorder %v937_v2, inf  ;;  %v944_v52 = vsel %vm940_vm6, 3.4028235e+38, %v936_v61  ;;  %vm947_vm9 = vcmp.eq.f32.partialorder %v943_v63, -inf  ;;  %v950_v50 = vsel %vm946_vm7, -3.4028235e+38, %v942_v48 }
  0xeb   :  { %v945_v31 = vsel %vm941_vm8, 3.4028235e+38, %v937_v2  ;;  %vm948_vm10 = vcmp.eq.f32.partialorder %v944_v52, -inf  ;;  %v951_v54 = vsel %vm947_vm9, -3.4028235e+38, %v943_v63  ;;  %954 = vst [vmem:[#allocation8] sm:$0xff] %v950_v50 }
  0xec   :  { %vm949_vm11 = vcmp.eq.f32.partialorder %v945_v31, -inf  ;;  %v952_v36 = vsel %vm948_vm10, -3.4028235e+38, %v944_v52  ;;  %955 = vst [vmem:[#allocation8 + $0x8] sm:$0xff] %v951_v54 }
  0xed   :  { %v953_v49 = vsel %vm949_vm11, -3.4028235e+38, %v945_v31  ;;  %956 = vst [vmem:[#allocation8 + $0x10] sm:$0xff] %v952_v36 }
  0xee   :  { %957 = vst [vmem:[#allocation8 + $0x18] sm:$0xff] %v953_v49 }
  0xef   :  { %970 = dma.vmem_to_hbm [thread:$0]  %s963_s27, 512, %s965_s30, [#allocation4], %s1195_s20, %s1195_s20, %s1196_s21  }
  0xf0   :  { %1192 = dma.done.wait [#allocation4], 512  }
  0xf1   :  { %1193 = vsyncadd [#allocation4], 4294966784 }
  0xf2   :  { %975 = vsyncpa [#allocation3], 1 }
  0xf3   :  { %976 = vsyncpa [#allocation6], 1 }
  0xf4   :  { %977 = vsyncpa [#allocation4], 1 }

</bundles_post_ra>
